<compile_context>
chip_gen: v5e
topology: v5e:2x2
jax: 0.10.0
libtpu: 0.0.40
codegen_flags: <defaults>
</compile_context>

<pallas_src>
import functools
import math

import jax
import jax.numpy as jnp
from jax import lax
from jax.experimental import pallas as pl
from jax.experimental.pallas import tpu as pltpu


def _sa_kernel(xcm_ref, wft_ref, bf_ref, wg_ref, bg_ref, wh_ref, bh_ref, gamma_ref,
               o_ref, a_scr, r_scr, acc_scr, *, ti, hw, hwp):
    """One grid step = (batch b, query tile t).

    xcm_ref : [1, C, HWp] channel-major x, resident per batch (HWp = padded H*W)
    wft_ref : [C, C8]  (= Wf^T)      bf_ref : [C8, 1]
    wg_ref  : [C8, C]                bg_ref : [C8, 1]
    wh_ref  : [C, C]                 bh_ref : [C, 1]
    gamma_ref: [1] scalar in SMEM
    o_ref   : [1, C, HWp]
    a_scr   : [C, HWp] bf16  (A = Wf^T @ (Wg x + bg), per batch)
    r_scr   : [1, HWp] f32   (r = bf^T @ (Wg x + bg), per batch)
    acc_scr : [C, HWp] f32   output accumulator over query tiles
    """
    it = pl.program_id(1)
    n_it = pl.num_programs(1)
    padded = hwp > hw

    @pl.when(it == 0)
    def _init():
        x_all = xcm_ref[0]                                              # [C, HWp]
        g = (jnp.dot(wg_ref[...], x_all, preferred_element_type=jnp.float32)
             + bg_ref[...])                                             # [C8, HWp] f32
        a_scr[...] = jnp.dot(wft_ref[...], g,
                             preferred_element_type=jnp.float32).astype(a_scr.dtype)
        r_scr[...] = jnp.sum(g * bf_ref[...], axis=0, keepdims=True)    # [1, HWp]
        acc_scr[...] = jnp.zeros_like(acc_scr)

    start = pl.multiple_of(it * ti, ti)
    x_t = xcm_ref[0, :, pl.ds(start, ti)]                               # [C, TI]

    # h projection for this query tile (channel-major).
    h_t = (jnp.dot(wh_ref[...], x_t, preferred_element_type=jnp.float32)
           + bh_ref[...])                                               # [C, TI] f32

    # scores s[i, j] = sum_c x[c, i] * A[c, j] + r[j]   -> [TI, HWp]
    # bf16 MXU operands, f32 accumulation.
    s = lax.dot_general(x_t.astype(jnp.bfloat16), a_scr[...],
                        dimension_numbers=(((0,), (0,)), ((), ())),
                        preferred_element_type=jnp.float32) + r_scr[...]

    if padded:  # mask pad keys out of the softmax
        key_idx = lax.broadcasted_iota(jnp.int32, (ti, hwp), 1)
        s = jnp.where(key_idx < hw, s, -1e30)

    # softmax over keys (torch Softmax(dim=2)); rows are complete -> exact per tile.
    m = jnp.max(s, axis=-1, keepdims=True)
    p = jnp.exp(s - m)
    inv = pl.reciprocal(jnp.sum(p, axis=-1, keepdims=True), approx=True)
    att = (p * inv).astype(jnp.bfloat16)                                # [TI, HWp]

    if padded:  # pad query columns of h contribute nothing to the output
        q_idx = lax.broadcasted_iota(jnp.int32, (1, ti), 1) + it * ti
        h_t = jnp.where(q_idx < hw, h_t, 0.0)

    # out[c, k] += sum_i h[c, i] * att[i, k]   (matches torch.bmm(h, attention))
    acc_scr[...] += jnp.dot(h_t.astype(jnp.bfloat16), att,
                            preferred_element_type=jnp.float32)

    @pl.when(it == n_it - 1)
    def _finalize():
        o_ref[0] = (gamma_ref[0] * acc_scr[...]).astype(o_ref.dtype) + xcm_ref[0]


def sa_forward(x, wf, bf, wg, bg, wh, bh, gamma):
    """x: [B, C, H, W]; wf, wg: [C//8, C]; wh: [C, C]; bf, bg: [C//8]; bh: [C]; gamma: [1]."""
    B, C, H, W = x.shape
    C8 = wf.shape[0]
    HW = H * W

    kind = jax.devices()[0].device_kind.lower()
    small_mxu = any(v in kind for v in ("v2", "v3", "v4", "v5"))   # 128-wide MXU gens
    v7x = "7" in kind

    # Query-tile size: 256 fills the 2x256 MXU on v6e/v7x; 128 otherwise.  HW that is
    # not a multiple of the tile is zero-padded (masked in-kernel), never TI = HW.
    if HW % 256 == 0 and not small_mxu:
        TI = 256
    else:
        TI = 128
    HWp = ((HW + TI - 1) // TI) * TI
    pad = HWp - HW
    n_it = HWp // TI

    x_cm = x.reshape(B, C, HW)                       # channel-major (HW on lanes)
    if pad:
        x_cm = jnp.pad(x_cm, ((0, 0), (0, 0), (0, pad)))

    wf_t = wf.T                                      # [C, C8]
    bf_col = bf.reshape(C8, 1)
    bg_col = bg.reshape(C8, 1)
    bh_col = bh.reshape(C, 1)
    gamma1 = gamma.reshape(1).astype(jnp.float32)

    itemsize = jnp.dtype(x.dtype).itemsize

    # ---- VMEM budgeting -------------------------------------------------------------
    x_block = C * HWp * itemsize                     # per-batch resident x block
    o_block = C * HWp * itemsize
    w_bytes = itemsize * (2 * C8 * C + C * C + 2 * C8 + C)
    scratch = C * HWp * 4 + C * HWp * 2 + HWp * 4    # acc (f32) + A (bf16) + r (f32)
    temps = 3 * TI * HWp * 4                         # s / p / att working set
    cap = (64 << 20) if v7x else (128 << 20)
    budget = int(cap * 0.9)

    def vmem_est(nbuf):
        return nbuf * (x_block + o_block) + 2 * w_bytes + scratch + temps

    big_spec_kwargs = {}
    nbuf = 2
    if vmem_est(2) > int(0.7 * budget):
        # The x / output block index only changes per batch, so single-buffering them
        # exposes just one DMA per batch while halving their VMEM footprint.
        big_spec_kwargs = dict(pipeline_mode=pl.Buffered(1))
        nbuf = 1
    vmem_limit = min(budget, max(32 << 20, int(1.5 * vmem_est(nbuf))))

    flops = B * (4 * C8 * C * HWp + 2 * C * C * HWp + 4 * C * HWp * HWp)
    transcendentals = B * (HWp * HWp + HWp)
    bytes_accessed = itemsize * 2 * B * C * HWp + 4 * w_bytes

    kernel = functools.partial(_sa_kernel, ti=TI, hw=HW, hwp=HWp)

    out_cm = pl.pallas_call(
        kernel,
        out_shape=jax.ShapeDtypeStruct((B, C, HWp), x.dtype),
        grid=(B, n_it),
        in_specs=[
            pl.BlockSpec((1, C, HWp), lambda b, t: (b, 0, 0), **big_spec_kwargs),
            pl.BlockSpec((C, C8), lambda b, t: (0, 0)),          # Wf^T (resident)
            pl.BlockSpec((C8, 1), lambda b, t: (0, 0)),          # bf
            pl.BlockSpec((C8, C), lambda b, t: (0, 0)),          # Wg (resident)
            pl.BlockSpec((C8, 1), lambda b, t: (0, 0)),          # bg
            pl.BlockSpec((C, C), lambda b, t: (0, 0)),           # Wh (resident)
            pl.BlockSpec((C, 1), lambda b, t: (0, 0)),           # bh
            pl.BlockSpec(memory_space=pltpu.MemorySpace.SMEM),   # gamma scalar
        ],
        out_specs=pl.BlockSpec((1, C, HWp), lambda b, t: (b, 0, 0), **big_spec_kwargs),
        scratch_shapes=[
            pltpu.VMEM((C, HWp), jnp.bfloat16),                  # A = Wf^T @ g
            pltpu.VMEM((1, HWp), jnp.float32),                   # r = bf^T @ g
            pltpu.VMEM((C, HWp), jnp.float32),                   # output accumulator
        ],
        compiler_params=pltpu.CompilerParams(
            dimension_semantics=("parallel", "arbitrary"),
            vmem_limit_bytes=vmem_limit),
        cost_estimate=pl.CostEstimate(flops=flops,
                                      transcendentals=transcendentals,
                                      bytes_accessed=bytes_accessed),
    )(x_cm, wf_t, bf_col, wg, bg_col, wh, bh_col, gamma1)

    if pad:
        out_cm = out_cm[:, :, :HW]
    return out_cm.reshape(B, C, H, W)


def sa_reference(x, wf, bf, wg, bg, wh, bh, gamma):
    """Plain-JAX mirror of the PyTorch SA.forward."""
    B, C, H, W = x.shape
    HW = H * W
    xf = x.reshape(B, C, HW)
    f = jnp.einsum('oc,bcp->bop', wf, xf) + bf[None, :, None]     # [B, C8, HW]
    g = jnp.einsum('oc,bcp->bop', wg, xf) + bg[None, :, None]     # [B, C8, HW]
    h = jnp.einsum('oc,bcp->bop', wh, xf) + bh[None, :, None]     # [B, C, HW]
    att = jnp.einsum('bci,bcj->bij', f, g)                        # bmm(f^T, g) -> [B, HW, HW]
    att = jax.nn.softmax(att, axis=-1)                            # Softmax(dim=2)
    out = jnp.einsum('bcj,bjk->bck', h, att)                      # bmm(h, att)
    return (gamma.reshape(()) * out + xf).reshape(B, C, H, W)


if __name__ == "__main__":
    def kaiming_uniform(k, shape, fan_in):
        bound = math.sqrt(6.0 / fan_in)   # nn.init.kaiming_uniform_ default gain
        return jax.random.uniform(k, shape, jnp.float32, minval=-bound, maxval=bound)

    key = jax.random.PRNGKey(0)

    # Case 1: SA(32) on [2, 32, 16, 16] (H*W = 256, no padding; zero biases as in init_weight).
    B, C, H, W = 2, 32, 16, 16
    C8 = C // 8
    kx, kf, kg, kh = jax.random.split(key, 4)
    x = jax.random.normal(kx, (B, C, H, W), jnp.float32)
    wf = kaiming_uniform(kf, (C8, C), C)
    wg = kaiming_uniform(kg, (C8, C), C)
    wh = kaiming_uniform(kh, (C, C), C)
    bf = jnp.zeros((C8,), jnp.float32)
    bg = jnp.zeros((C8,), jnp.float32)
    bh = jnp.zeros((C,), jnp.float32)
    # torch initializes gamma to 0 (forward would return x exactly); use a nonzero value
    # so the attention path is actually exercised by the check.
    gamma = jnp.array([0.5], jnp.float32)

    out = sa_forward(x, wf, bf, wg, bg, wh, bh, gamma)
    jax.block_until_ready(out)
    ref = sa_reference(x, wf, bf, wg, bg, wh, bh, gamma)
    assert out.shape == (B, C, H, W)
    err1 = float(jnp.max(jnp.abs(out - ref)))
    assert jnp.allclose(out, ref, atol=5e-2, rtol=5e-2), err1

    # Case 2: non-128-multiple spatial map (H*W = 144 -> padded/masked) with nonzero biases.
    B2, C2, H2, W2 = 1, 32, 12, 12
    C82 = C2 // 8
    k2 = jax.random.split(jax.random.PRNGKey(0), 8)
    x2 = jax.random.normal(k2[0], (B2, C2, H2, W2), jnp.float32)
    wf2 = kaiming_uniform(k2[1], (C82, C2), C2)
    wg2 = kaiming_uniform(k2[2], (C82, C2), C2)
    wh2 = kaiming_uniform(k2[3], (C2, C2), C2)
    bf2 = 0.1 * jax.random.normal(k2[4], (C82,), jnp.float32)
    bg2 = 0.1 * jax.random.normal(k2[5], (C82,), jnp.float32)
    bh2 = 0.1 * jax.random.normal(k2[6], (C2,), jnp.float32)
    gamma2 = jnp.array([0.7], jnp.float32)

    out2 = sa_forward(x2, wf2, bf2, wg2, bg2, wh2, bh2, gamma2)
    jax.block_until_ready(out2)
    ref2 = sa_reference(x2, wf2, bf2, wg2, bg2, wh2, bh2, gamma2)
    assert out2.shape == (B2, C2, H2, W2)
    err2 = float(jnp.max(jnp.abs(out2 - ref2)))
    assert jnp.allclose(out2, ref2, atol=5e-2, rtol=5e-2), err2

    print("KERNEL_OK")
</pallas_src>

<mosaic_0001>
module attributes {stable_mosaic.version = 11 : i64} {
  func.func @_sa_kernel(%arg0: i32, %arg1: i32, %arg2: memref<1x32x256xf32, #tpu.memory_space<vmem>>, %arg3: memref<32x4xf32, #tpu.memory_space<vmem>>, %arg4: memref<4x1xf32, #tpu.memory_space<vmem>>, %arg5: memref<4x32xf32, #tpu.memory_space<vmem>>, %arg6: memref<4x1xf32, #tpu.memory_space<vmem>>, %arg7: memref<32x32xf32, #tpu.memory_space<vmem>>, %arg8: memref<32x1xf32, #tpu.memory_space<vmem>>, %arg9: memref<1xf32, #tpu.memory_space<smem>>, %arg10: memref<1x32x256xf32, #tpu.memory_space<vmem>>, %arg11: memref<32x256xbf16, #tpu.memory_space<vmem>>, %arg12: memref<1x256xf32, #tpu.memory_space<vmem>>, %arg13: memref<32x256xf32, #tpu.memory_space<vmem>>) attributes {dimension_semantics = [#tpu.dimension_semantics<parallel>, #tpu.dimension_semantics<arbitrary>], iteration_bounds = array<i64: 2, 1>, scalar_prefetch = 0 : i64, scratch_operands = 3 : i64, tpu.core_type = #tpu.core_type<tc>, window_params = [{transform_indices = @transform_0, window_bounds = array<i64: 1, 32, 256>}, {pipeline_mode = #tpu.pipeline_mode<synchronous>, transform_indices = @transform_1, window_bounds = array<i64: 32, 4>}, {pipeline_mode = #tpu.pipeline_mode<synchronous>, transform_indices = @transform_2, window_bounds = array<i64: 4, 1>}, {pipeline_mode = #tpu.pipeline_mode<synchronous>, transform_indices = @transform_3, window_bounds = array<i64: 4, 32>}, {pipeline_mode = #tpu.pipeline_mode<synchronous>, transform_indices = @transform_4, window_bounds = array<i64: 4, 1>}, {pipeline_mode = #tpu.pipeline_mode<synchronous>, transform_indices = @transform_5, window_bounds = array<i64: 32, 32>}, {pipeline_mode = #tpu.pipeline_mode<synchronous>, transform_indices = @transform_6, window_bounds = array<i64: 32, 1>}, {transform_indices = @transform_7, window_bounds = array<i64: 1>}, {transform_indices = @transform_8, window_bounds = array<i64: 1, 32, 256>}]} {
    %c0_i32 = arith.constant 0 : i32
    %0 = arith.cmpi eq, %arg1, %c0_i32 : i32
    %1 = arith.extui %0 : i1 to i32
    %c0_i32_0 = arith.constant 0 : i32
    %2 = arith.cmpi ne, %1, %c0_i32_0 : i32
    scf.if %2 {
      %c0_20 = arith.constant 0 : index
      %c0_21 = arith.constant 0 : index
      %c0_22 = arith.constant 0 : index
      %38 = vector.load %arg2[%c0_20, %c0_21, %c0_22] : memref<1x32x256xf32, #tpu.memory_space<vmem>>, vector<1x32x256xf32>
      %39 = vector.shape_cast %38 : vector<1x32x256xf32> to vector<32x256xf32>
      %c0_23 = arith.constant 0 : index
      %c0_24 = arith.constant 0 : index
      %40 = vector.load %arg5[%c0_23, %c0_24] : memref<4x32xf32, #tpu.memory_space<vmem>>, vector<4x32xf32>
      %cst_25 = arith.constant dense<0.000000e+00> : vector<4x256xf32>
      %41 = tpu.matmul %40, %39, %cst_25 {dimension_numbers = #tpu.dot_dimension_numbers<[1], [0], [0], [1], [0, 0, 1, 1], [], []>} : vector<4x32xf32>, vector<32x256xf32>, vector<4x256xf32> -> vector<4x256xf32>
      %c0_26 = arith.constant 0 : index
      %c0_27 = arith.constant 0 : index
      %42 = vector.load %arg6[%c0_26, %c0_27] : memref<4x1xf32, #tpu.memory_space<vmem>>, vector<4x1xf32>
      %43 = vector.broadcast %42 : vector<4x1xf32> to vector<4x256xf32>
      %44 = arith.addf %41, %43 : vector<4x256xf32>
      %c0_28 = arith.constant 0 : index
      %c0_29 = arith.constant 0 : index
      %45 = vector.load %arg3[%c0_28, %c0_29] : memref<32x4xf32, #tpu.memory_space<vmem>>, vector<32x4xf32>
      %cst_30 = arith.constant dense<0.000000e+00> : vector<32x256xf32>
      %46 = tpu.matmul %45, %44, %cst_30 {dimension_numbers = #tpu.dot_dimension_numbers<[1], [0], [0], [1], [0, 0, 1, 1], [], []>} : vector<32x4xf32>, vector<4x256xf32>, vector<32x256xf32> -> vector<32x256xf32>
      %47 = arith.truncf %46 : vector<32x256xf32> to vector<32x256xbf16>
      %c0_31 = arith.constant 0 : index
      %c0_32 = arith.constant 0 : index
      %48 = vector.load %arg11[%c0_31, %c0_32] : memref<32x256xbf16, #tpu.memory_space<vmem>>, vector<32x256xbf16>
      tpu.vector_store %arg11[%c0_31, %c0_32], %47 {strides = array<i32>} : memref<32x256xbf16, #tpu.memory_space<vmem>>, vector<32x256xbf16>,
      %c0_33 = arith.constant 0 : index
      %c0_34 = arith.constant 0 : index
      %49 = vector.load %arg4[%c0_33, %c0_34] : memref<4x1xf32, #tpu.memory_space<vmem>>, vector<4x1xf32>
      %50 = vector.broadcast %49 : vector<4x1xf32> to vector<4x256xf32>
      %51 = arith.mulf %44, %50 : vector<4x256xf32>
      %cst_35 = arith.constant dense<0.000000e+00> : vector<256xf32>
      %52 = vector.multi_reduction <add>, %51, %cst_35 [0] : vector<4x256xf32> to vector<256xf32>
      %53 = vector.shape_cast %52 : vector<256xf32> to vector<1x256xf32>
      %c0_36 = arith.constant 0 : index
      %c0_37 = arith.constant 0 : index
      %54 = vector.load %arg12[%c0_36, %c0_37] : memref<1x256xf32, #tpu.memory_space<vmem>>, vector<1x256xf32>
      tpu.vector_store %arg12[%c0_36, %c0_37], %53 {strides = array<i32>} : memref<1x256xf32, #tpu.memory_space<vmem>>, vector<1x256xf32>,
      %cst_38 = arith.constant 0.000000e+00 : f32
      %55 = vector.broadcast %cst_38 : f32 to vector<32x256xf32>
      %c0_39 = arith.constant 0 : index
      %c0_40 = arith.constant 0 : index
      %56 = vector.load %arg13[%c0_39, %c0_40] : memref<32x256xf32, #tpu.memory_space<vmem>>, vector<32x256xf32>
      tpu.vector_store %arg13[%c0_39, %c0_40], %55 {strides = array<i32>} : memref<32x256xf32, #tpu.memory_space<vmem>>, vector<32x256xf32>,
    } else {
    }
    %c256_i32 = arith.constant 256 : i32
    %3 = arith.muli %arg1, %c256_i32 : i32
    %4 = tpu.assume_multiple %3, 256 : i32
    %c0 = arith.constant 0 : index
    %c0_1 = arith.constant 0 : index
    %5 = arith.index_cast %4 : i32 to index
    %6 = vector.load %arg2[%c0, %c0_1, %5] : memref<1x32x256xf32, #tpu.memory_space<vmem>>, vector<1x32x256xf32>
    %7 = vector.shape_cast %6 : vector<1x32x256xf32> to vector<32x256xf32>
    %c0_2 = arith.constant 0 : index
    %c0_3 = arith.constant 0 : index
    %8 = vector.load %arg7[%c0_2, %c0_3] : memref<32x32xf32, #tpu.memory_space<vmem>>, vector<32x32xf32>
    %cst = arith.constant dense<0.000000e+00> : vector<32x256xf32>
    %9 = tpu.matmul %8, %7, %cst {dimension_numbers = #tpu.dot_dimension_numbers<[1], [0], [0], [1], [0, 0, 1, 1], [], []>} : vector<32x32xf32>, vector<32x256xf32>, vector<32x256xf32> -> vector<32x256xf32>
    %c0_4 = arith.constant 0 : index
    %c0_5 = arith.constant 0 : index
    %10 = vector.load %arg8[%c0_4, %c0_5] : memref<32x1xf32, #tpu.memory_space<vmem>>, vector<32x1xf32>
    %11 = vector.broadcast %10 : vector<32x1xf32> to vector<32x256xf32>
    %12 = arith.addf %9, %11 : vector<32x256xf32>
    %13 = arith.truncf %7 : vector<32x256xf32> to vector<32x256xbf16>
    %c0_6 = arith.constant 0 : index
    %c0_7 = arith.constant 0 : index
    %14 = vector.load %arg11[%c0_6, %c0_7] : memref<32x256xbf16, #tpu.memory_space<vmem>>, vector<32x256xbf16>
    %cst_8 = arith.constant dense<0.000000e+00> : vector<256x256xf32>
    %15 = tpu.matmul %13, %14, %cst_8 {dimension_numbers = #tpu.dot_dimension_numbers<[0], [0], [1], [1], [0, 1, 1, 1], [], []>} : vector<32x256xbf16>, vector<32x256xbf16>, vector<256x256xf32> -> vector<256x256xf32>
    %c0_9 = arith.constant 0 : index
    %c0_10 = arith.constant 0 : index
    %16 = vector.load %arg12[%c0_9, %c0_10] : memref<1x256xf32, #tpu.memory_space<vmem>>, vector<1x256xf32>
    %17 = vector.broadcast %16 : vector<1x256xf32> to vector<256x256xf32>
    %18 = arith.addf %15, %17 : vector<256x256xf32>
    %cst_11 = arith.constant dense<0xFF800000> : vector<256xf32>
    %19 = vector.multi_reduction <maximumf>, %18, %cst_11 [1] : vector<256x256xf32> to vector<256xf32>
    %20 = vector.shape_cast %19 : vector<256xf32> to vector<256x1xf32>
    %21 = vector.broadcast %20 : vector<256x1xf32> to vector<256x256xf32>
    %22 = arith.subf %18, %21 : vector<256x256xf32>
    %23 = math.exp %22 : vector<256x256xf32>
    %cst_12 = arith.constant dense<0.000000e+00> : vector<256xf32>
    %24 = vector.multi_reduction <add>, %23, %cst_12 [1] : vector<256x256xf32> to vector<256xf32>
    %25 = vector.shape_cast %24 : vector<256xf32> to vector<256x1xf32>
    %26 = tpu.reciprocal %25 {approx = true} : vector<256x1xf32> -> vector<256x1xf32>
    %27 = vector.broadcast %26 : vector<256x1xf32> to vector<256x256xf32>
    %28 = arith.mulf %23, %27 : vector<256x256xf32>
    %29 = arith.truncf %28 : vector<256x256xf32> to vector<256x256xbf16>
    %c0_13 = arith.constant 0 : index
    %c0_14 = arith.constant 0 : index
    %30 = vector.load %arg13[%c0_13, %c0_14] : memref<32x256xf32, #tpu.memory_space<vmem>>, vector<32x256xf32>
    %31 = arith.truncf %12 : vector<32x256xf32> to vector<32x256xbf16>
    %cst_15 = arith.constant dense<0.000000e+00> : vector<32x256xf32>
    %32 = tpu.matmul %31, %29, %cst_15 {dimension_numbers = #tpu.dot_dimension_numbers<[1], [0], [0], [1], [0, 0, 1, 1], [], []>} : vector<32x256xbf16>, vector<256x256xbf16>, vector<32x256xf32> -> vector<32x256xf32>
    %33 = arith.addf %30, %32 : vector<32x256xf32>
    %c0_16 = arith.constant 0 : index
    %c0_17 = arith.constant 0 : index
    %34 = vector.load %arg13[%c0_16, %c0_17] : memref<32x256xf32, #tpu.memory_space<vmem>>, vector<32x256xf32>
    tpu.vector_store %arg13[%c0_16, %c0_17], %33 {strides = array<i32>} : memref<32x256xf32, #tpu.memory_space<vmem>>, vector<32x256xf32>,
    %c0_i32_18 = arith.constant 0 : i32
    %35 = arith.cmpi eq, %arg1, %c0_i32_18 : i32
    %36 = arith.extui %35 : i1 to i32
    %c0_i32_19 = arith.constant 0 : i32
    %37 = arith.cmpi ne, %36, %c0_i32_19 : i32
    scf.if %37 {
      %c0_20 = arith.constant 0 : index
      %38 = memref.load %arg9[%c0_20] : memref<1xf32, #tpu.memory_space<smem>>
      %c0_21 = arith.constant 0 : index
      %c0_22 = arith.constant 0 : index
      %39 = vector.load %arg13[%c0_21, %c0_22] : memref<32x256xf32, #tpu.memory_space<vmem>>, vector<32x256xf32>
      %40 = vector.broadcast %38 : f32 to vector<32x256xf32>
      %41 = arith.mulf %40, %39 : vector<32x256xf32>
      %c0_23 = arith.constant 0 : index
      %c0_24 = arith.constant 0 : index
      %c0_25 = arith.constant 0 : index
      %42 = vector.load %arg2[%c0_23, %c0_24, %c0_25] : memref<1x32x256xf32, #tpu.memory_space<vmem>>, vector<1x32x256xf32>
      %43 = vector.shape_cast %42 : vector<1x32x256xf32> to vector<32x256xf32>
      %44 = arith.addf %41, %43 : vector<32x256xf32>
      %c0_26 = arith.constant 0 : index
      %c0_27 = arith.constant 0 : index
      %c0_28 = arith.constant 0 : index
      %45 = vector.load %arg10[%c0_26, %c0_27, %c0_28] : memref<1x32x256xf32, #tpu.memory_space<vmem>>, vector<1x32x256xf32>
      %46 = vector.shape_cast %45 : vector<1x32x256xf32> to vector<32x256xf32>
      %47 = vector.shape_cast %44 : vector<32x256xf32> to vector<1x32x256xf32>
      tpu.vector_store %arg10[%c0_26, %c0_27, %c0_28], %47 {strides = array<i32>} : memref<1x32x256xf32, #tpu.memory_space<vmem>>, vector<1x32x256xf32>,
    } else {
    }
    return
  }
  func.func @transform_0(%arg0: i32, %arg1: i32) -> (i32, i32, i32) {
    %c0_i32 = arith.constant 0 : i32
    %c0_i32_0 = arith.constant 0 : i32
    %c0_i32_1 = arith.constant 0 : i32
    return %arg0, %c0_i32, %c0_i32_0 : i32, i32, i32
  }
  func.func @transform_1(%arg0: i32, %arg1: i32) -> (i32, i32) {
    %c0_i32 = arith.constant 0 : i32
    %c0_i32_0 = arith.constant 0 : i32
    %c0_i32_1 = arith.constant 0 : i32
    return %c0_i32, %c0_i32_0 : i32, i32
  }
  func.func @transform_2(%arg0: i32, %arg1: i32) -> (i32, i32) {
    %c0_i32 = arith.constant 0 : i32
    %c0_i32_0 = arith.constant 0 : i32
    %c0_i32_1 = arith.constant 0 : i32
    return %c0_i32, %c0_i32_0 : i32, i32
  }
  func.func @transform_3(%arg0: i32, %arg1: i32) -> (i32, i32) {
    %c0_i32 = arith.constant 0 : i32
    %c0_i32_0 = arith.constant 0 : i32
    %c0_i32_1 = arith.constant 0 : i32
    return %c0_i32, %c0_i32_0 : i32, i32
  }
  func.func @transform_4(%arg0: i32, %arg1: i32) -> (i32, i32) {
    %c0_i32 = arith.constant 0 : i32
    %c0_i32_0 = arith.constant 0 : i32
    %c0_i32_1 = arith.constant 0 : i32
    return %c0_i32, %c0_i32_0 : i32, i32
  }
  func.func @transform_5(%arg0: i32, %arg1: i32) -> (i32, i32) {
    %c0_i32 = arith.constant 0 : i32
    %c0_i32_0 = arith.constant 0 : i32
    %c0_i32_1 = arith.constant 0 : i32
    return %c0_i32, %c0_i32_0 : i32, i32
  }
  func.func @transform_6(%arg0: i32, %arg1: i32) -> (i32, i32) {
    %c0_i32 = arith.constant 0 : i32
    %c0_i32_0 = arith.constant 0 : i32
    %c0_i32_1 = arith.constant 0 : i32
    return %c0_i32, %c0_i32_0 : i32, i32
  }
  func.func @transform_7(%arg0: i32, %arg1: i32) -> i32 {
    %c0_i32 = arith.constant 0 : i32
    %c0_i32_0 = arith.constant 0 : i32
    return %c0_i32 : i32
  }
  func.func @transform_8(%arg0: i32, %arg1: i32) -> (i32, i32, i32) {
    %c0_i32 = arith.constant 0 : i32
    %c0_i32_0 = arith.constant 0 : i32
    %c0_i32_1 = arith.constant 0 : i32
    return %arg0, %c0_i32, %c0_i32_0 : i32, i32, i32
  }
}

</mosaic_0001>

<bundles_post_ra>
// kernel: tpu_custom_call.1
= control target key start
LH: loop header
LB: loop body
LE: loop exit
PB: predicated region body
PF: predicated region fallthrough
CT: control target
= control target key end

     0   :  { %s3386_s0 = inlined_call_operand.hbm [shape: f32[2,32,256], index: 0, kind: input, shape index: {}]   ;;  %s3387_s1 = inlined_call_operand.vmem [shape: f32[32,4], index: 1, kind: input, shape index: {}]   ;;  %s3388_s2 = inlined_call_operand.vmem [shape: f32[4,1], index: 2, kind: input, shape index: {}]   ;;  %s3389_s3 = inlined_call_operand.vmem [shape: f32[4,32], index: 3, kind: input, shape index: {}]   ;;  %s3390_s4 = inlined_call_operand.vmem [shape: f32[4,1], index: 4, kind: input, shape index: {}]   ;;  %s3391_s5 = inlined_call_operand.vmem [shape: f32[32,32], index: 5, kind: input, shape index: {}]   ;;  %s3392_s6 = inlined_call_operand.vmem [shape: f32[32,1], index: 6, kind: input, shape index: {}]   ;;  %s3393_s7 = inlined_call_operand.<no memory space> [shape: f32[1], index: 7, kind: input, shape index: {}]   ;;  %s3394_s8 = inlined_call_operand.hbm [shape: f32[2,32,256], index: 8, kind: output, shape index: {}]  }
   0x1   :  { %13 = sst [smem:[#allocation5]] %s3393_s7 }
   0x2   :  { %14 = vsyncpa [#allocation7], 0 }
   0x3   :  { %16 = vsyncpa [#allocation7 + $0x1], 0 }
   0x4   :  { %17 = vsyncpa [#allocation8], 0 }
   0x5   :  { %19 = vsyncpa [#allocation8 + $0x1], 0  ;;  %s2214_s29 = smov 0   ;;  %s2216_s30 = smov 0  }
   0x6   :  { %s2218_s9 = smov 0   ;;  %s2220_s10 = smov 0  }
   0x7   :  { %s2222_s11 = smov 0   ;;  %s2224_s12 = smov 0  }
   0x8 LB: > { %3441 = sst [smem:[#allocation12_spill]] %s2155_s11  ;;  %s1690_s7 = sadd.s32 4294967295, %s2159_s12   ;;  %s2159_s12 = sphi %s2224_s12, %s25_s12   ;;  %s2155_s11 = sphi %s2222_s11, %s3556_s11   ;;  %s2151_s10 = sphi %s2220_s10, %s3555_s10   ;;  %s2147_s9 = sphi %s2218_s9, %s3559_s9   ;;  %s2143_s30 = sphi %s2216_s30, %s3558_s30   ;;  %s2139_s29 = sphi %s2214_s29, %s3557_s29  }
   0x9   : > { %s1691_s13 = sadd.s32 4294967294, %s2159_s12   ;;  %s37_s14 = sadd.s32 1, %s2155_s11 }
   0xa   : > { %s44_s15 = sadd.s32 1, %s2147_s9  ;;  %p39_p0 = scmp.ge.s32.totalorder %s37_s14, 2 }
   0xb   : > { %p51_p1 = scmp.ne.s32.totalorder %s2147_s9, %s2143_s30  ;;  %p52_p2 = scmp.eq.s32.totalorder %s2159_s12, 0 }
   0xc   : > { %p57_p3 = scmp.ne.s32.totalorder %s2143_s30, %s2139_s29  ;;  %s3561_s14 = smov (%p39_p0, %s37_s14), 0 }
   0xd   : > { %3442 = sst [smem:[#allocation13_spill]] %s3561_s14  ;;  %p2255_p4 = por %p52_p2, %p51_p1 }
   0xe   : > { %p58_p5 = scmp.eq.s32.totalorder %s1690_s7, 0  ;;  %s41_s17 = ssub.s32 %s2155_s11, %s3561_s14 }
   0xf   : > { %p228_p6 = scmp.eq.s32.totalorder %s1690_s7, 1  ;;  %p42_p7 = scmp.eq.s32.totalorder %s41_s17, 0 }
  0x10   : > { %p2261_p8 = por %p58_p5, %p57_p3  ;;  %p234_p10 = scmp.eq.s32.totalorder %s1691_s13, 1 }
  0x11   : > { %p2265_p9 = por %p228_p6, %p51_p1  ;;  %p1693_p12 = scmp.ge.s32.totalorder %s2159_s12, 2 }
  0x12   : > { %s2270_s20 = scalar_select %p42_p7, %s2147_s9, %s44_s15  }
  0x13   : > { %p2272_p11 = por %p234_p10, %p57_p3  ;;  %p1797_p13 = scmp.lt.s32.totalorder %s2159_s12, 2 }
  0x14   : > { %s275_s22 = sand.u32 1, %s2147_s9   ;;  %s1773_s24 = sshll.u32 %s2155_s11, 6 }
  0x15   : > { %s1694_s23 = sshll.u32 %s275_s22, 6  ;;  %s284_s27 = scalar_lea.hbm %s3386_s0, %s1773_s24 }
  0x16   : > { %s279_s28 = scalar_lea.vmem [#allocation6], %s1694_s23  ;;  %s285_s17 = sshll.u32 %s284_s27, 4  ;;  %s286_s17 = int_to_ptr.hbm [resolvable:$true] %s285_s17 }
  0x17   : > { %s287_s7 = sshll.u32 %s279_s28, 4  ;;  %p1790_p0 = pnand %p1797_p13, %p2255_p4  ;;  %s288_s7 = int_to_ptr.vmem [resolvable:$true] %s287_s7 }
  0x18   : > { %p1697_p1 = scmp.ge.s32.totalorder %s2159_s12, 1  ;;  %s276_s13 = scalar_lea.sflag [#allocation7], %s275_s22 }
  0x19   : > { %s2161_s15 = smov 256   ;;  %s2162_s14 = smov 16  }
  0x1a   : > { %1792 = dma.hbm_to_vmem [thread:$0]  (!%p1790_p0), %s286_s17, 1024, %s288_s7, %s276_s13, %s2161_s15, %s2161_s15, %s2162_s14  }
  0x1b   : > { %p295_p2 = scmp.lt.s32.totalorder %s2159_s12, 3 }
  0x1d   : > { %p296_p3 = pnand %p1697_p1, %p295_p2 }
  0x1f   : > { %299 = sbr.rel (%p296_p3) target bundleno = 1334 (0x536), region = 52 }
  0x24   : > { %s2288_s11 = sand.u32 1, %s2143_s30  }
  0x25   : > { %s1698_s23 = sshll.u32 %s2288_s11, 6  ;;  %s302_s24 = scalar_lea.sflag [#allocation7], %s2288_s11 }
  0x26   : > { %s2294_s16 = scalar_lea.vmem [#allocation6], %s1698_s23 }
  0x27   : > { %2130 = dma.done.wait (%p2261_p8), %s302_s24, 1024  }
  0x28   : > { %2132 = vsyncadd (%p2261_p8), %s302_s24, 4294966272  ;;  %v2163_v0 = vmov 0   ;;  %v350_v1 = vld [vmem:[%s2294_s16 + $0x30] sm:$0xff]  ;;  %v351_v2 = vld [vmem:[%s2294_s16 + $0x38] sm:$0xff]  ;;  %vm359_vm0 = vcmask 261120   ;;  %vm420_vm1 = vcmask 1043456   ;;  %v521_v37 = vlaneseq }
  0x29   : > { %1852 = vset.pattern.permute.xlu0 %v2163_v0  ;;  %1853 = vset.pattern.permute.xlu1 %v2163_v0  ;;  %v348_v3 = vld [vmem:[%s2294_s16 + $0x20] sm:$0xff]  ;;  %v349_v4 = vld [vmem:[%s2294_s16 + $0x28] sm:$0xff]  ;;  %v346_v5 = vld [vmem:[%s2294_s16 + $0x10] sm:$0xff]  ;;  %vm407_vm2 = vcmask 31744   ;;  %vm518_vm3 = vcmask 1040384   ;;  %s1549_s28 = sld [smem:[#allocation5]] }
  0x2a   : > { %1854 = vset.pattern.permute.xlu2 %v2163_v0  ;;  %375 = vmatpush.msra.mxu0 %v350_v1  ;;  %v347_v6 = vld [vmem:[%s2294_s16 + $0x18] sm:$0xff]  ;;  %v344_v9 = vld [vmem:[%s2294_s16] sm:$0xff]  ;;  %v345_v10 = vld [vmem:[%s2294_s16 + $0x8] sm:$0xff]  ;;  %v648_v14 = vpack.c.bf16 %v350_v1, %v348_v3  ;;  %v649_v15 = vpack.c.bf16 %v351_v2, %v349_v4  ;;  %vm523_vm4 = vcmp.lt.s32.totalorder %v521_v37, 256  ;;  %s3330_s7 = scalar_lea.vmem [#allocation9], %s1698_s23  ;;  %s1778_s23 = sshll.u32 %s2151_s10, 6 }
  0x2b   : > { %395 = vmatpush.msra.mxu1 %v351_v2  ;;  %v353_v7 = vld [vmem:[%s3390_s4] sm:$0xf]  ;;  %v646_v12 = vpack.c.bf16 %v346_v5, %v344_v9  ;;  %v647_v13 = vpack.c.bf16 %v347_v6, %v345_v10  ;;  %v404_v22 = vld [vmem:[%s3387_s1 + $0x8] sm:$0xff]  ;;  %v405_v34 = vld [vmem:[%s3387_s1 + $0x10] sm:$0xff]  ;;  %s1603_s15 = scalar_lea.hbm %s3394_s8, %s1778_s23  ;;  %s1604_s24 = sshll.u32 %s3330_s7, 4  ;;  %s1605_s24 = int_to_ptr.vmem [resolvable:$true] %s1604_s24 }
  0x2c   : > { %376 = vmatpush.msra.mxu0 %v348_v3  ;;  %v493_v8 = vld [vmem:[%s3388_s2] sm:$0xf]  ;;  %356 = vperm.xlu0 %1852, %v353_v7   ;;  %v406_v43 = vld [vmem:[%s3387_s1 + $0x18] sm:$0xff]  ;;  %v548_v51 = vld [vmem:[%s3391_s5 + $0x8] sm:$0xff]  ;;  %s1606_s14 = sshll.u32 %s1603_s15, 4  ;;  %s1592_s18 = scalar_lea.sflag [#allocation8], %s2288_s11  ;;  %s1607_s14 = int_to_ptr.hbm [resolvable:$true] %s1606_s14 }
  0x2d   : > { %396 = vmatpush.msra.mxu1 %v349_v4  ;;  %496 = vperm.xlu1 %1853, %v493_v8   ;;  %v352_v11 = vld [vmem:[%s3389_s3] sm:$0xf]  ;;  %v549_v53 = vld [vmem:[%s3391_s5 + $0x10] sm:$0xff]  ;;  %v550_v55 = vld [vmem:[%s3391_s5 + $0x18] sm:$0xff]  ;;  %s2091_s10 = sshra.s32 %s1607_s14, 4  ;;  %s2097_s27 = scalar_lea.hbm %s3394_s8, 128  ;;  %s2092_s10 = int_to_ptr.hbm [resolvable:$true] %s2091_s10 }
  0x2e   : > { %377 = vmatpush.msra.mxu0 %v346_v5  ;;  %v403_v25 = vld [vmem:[%s3387_s1] sm:$0xff]  ;;  %s2093_s22 = scalar_lea.hbm %s2092_s10, 64  ;;  %p2098_p7 = scmp.lt.s32.totalorder %s2092_s10, %s3394_s8 }
  0x2f   : > { %397 = vmatpush.msra.mxu1 %v347_v6  ;;  %v547_v49 = vld [vmem:[%s3391_s5] sm:$0xff]  ;;  %p2094_p4 = scmp.ne.s32.totalorder %s2092_s10, %s2093_s22  ;;  %p2099_p8 = scmp.lt.s32.totalorder %s2097_s27, %s2093_s22 }
  0x30   : > { %378 = vmatpush.msra.mxu0 %v344_v9 }
  0x31   : > { %398 = vmatpush.msra.mxu1 %v345_v10  ;;  %1700 = vmatmul.msk.f32.vlgmr.msra.gmra.mxu0 %vm359_vm0, %v352_v11  ;;  %p2095_p5 = pnand %p2094_p4, %p2265_p9  ;;  %p2100_p10 = por %p2099_p8, %p2098_p7 }
  0x32   : > { %1701 = vmatmul.msk.f32.vlgmr.msra.gmra.mxu1 %vm359_vm0, %v352_v11 }
  0x33   : > { %p2096_p6 = pneg %p2095_p5 }
  0x35   : > { %p2101_p13 = pnand %p2100_p10, %p2096_p6 }
  0x4e   : > { %660 = vxpose.binary.xlu0.c.b16.start [1/4] (short) %v647_v13, %v646_v12, 128 }
  0x5e   : > { %661 = vxpose.binary.xlu0.c.b16.end [2/4] (short) %v649_v15, %v648_v14, 128 }
  0x9e   : > { %v357_v16 = vpop.permute.xlu0 %356 }
  0x9f   : > { %v497_v17 = vpop.permute.xlu1 %496 }
  0xae   : > { %v380_v18 = vpop.f32.mrf.mxu0 }
  0xaf   : > { %v400_v19 = vpop.f32.mrf.mxu1  ;;  %v381_v20 = vadd.f32 %v380_v18, %v357_v16 }
  0xb0   : > { %v401_v21 = vadd.f32 %v400_v19, %v357_v16 }
  0xb1   : > { %v499_v23 = vmul.f32 %v497_v17, %v381_v20  ;;  %1702 = vmatpush.msk.msrb.mxu0 %vm420_vm1, %v381_v20  ;;  %1779 = vmatpush.msk.msra.mxu2 %vm420_vm1, %v381_v20 }
  0xb2   : > { %v500_v24 = vmul.f32 %v497_v17, %v401_v21  ;;  %1707 = vmatpush.msk.msrb.mxu1 %vm420_vm1, %v401_v21  ;;  %1780 = vmatpush.msk.msra.mxu3 %vm420_vm1, %v401_v21 }
  0xb3   : > { %v501_v26 = vsel %vm420_vm1, %v499_v23, 0.0  ;;  %1704 = vmatmul.msk.f32.vlgmr.msra.gmra.mxu2 %vm407_vm2, %v404_v22  ;;  %1709 = vmatmul.msk.f32.vlgmr.msra.gmra.mxu3 %vm407_vm2, %v404_v22 }
  0xb4   : > { %v508_v27 = vsel %vm420_vm1, %v500_v24, 0.0  ;;  %v502_v28 = vrot.slane %v501_v26, 4  ;;  %1703 = vmatmul.msk.f32.vlgmr.msrb.gmra.mxu0 %vm407_vm2, %v403_v25  ;;  %1708 = vmatmul.msk.f32.vlgmr.msrb.gmra.mxu1 %vm407_vm2, %v403_v25 }
  0xb5   : > { %v509_v29 = vrot.slane %v508_v27, 4  ;;  %600 = vmatpush.msra.mxu0 %v350_v1  ;;  %629 = vmatpush.msra.mxu1 %v351_v2 }
  0xb6   : > { %v503_v30 = vadd.f32 %v502_v28, %v501_v26 }
  0xb7   : > { %v510_v31 = vadd.f32 %v509_v29, %v508_v27  ;;  %601 = vmatpush.msra.mxu0 %v348_v3  ;;  %630 = vmatpush.msra.mxu1 %v349_v4 }
  0xb8   : > { %v504_v32 = vrot.slane %v503_v30, 2 }
  0xb9   : > { %v511_v33 = vrot.slane %v510_v31, 2  ;;  %602 = vmatpush.msra.mxu0 %v346_v5  ;;  %631 = vmatpush.msra.mxu1 %v347_v6 }
  0xba   : > { %v505_v35 = vadd.f32 %v504_v32, %v503_v30 }
  0xbb   : > { %v512_v36 = vadd.f32 %v511_v33, %v510_v31  ;;  %1705 = vmatmul.msk.f32.gmra.mxu2 %vm407_vm2, %v405_v34  ;;  %1710 = vmatmul.msk.f32.gmra.mxu3 %vm407_vm2, %v405_v34 }
  0xbc   : > { %v506_v38 = vrot.slane %v505_v35, 1  ;;  %603 = vmatpush.msra.mxu0 %v344_v9  ;;  %632 = vmatpush.msra.mxu1 %v345_v10 }
  0xbd   : > { %v513_v39 = vrot.slane %v512_v36, 1  ;;  %1712 = vmatmul.msk.f32.vlgmr.msra.gmra.mxu0 %vm359_vm0, %v547_v49  ;;  %1716 = vmatmul.msk.f32.vlgmr.msra.gmra.mxu1 %vm359_vm0, %v547_v49 }
  0xbe   : > { %v507_v41 = vadd.f32 %v506_v38, %v505_v35 }
  0xbf   : > { %v514_v40 = vadd.f32 %v513_v39, %v512_v36 }
  0xc1   : > { %v517_v42 = vrot.slane %v514_v40, 7 }
  0xc3   : > { %v519_v44 = vsel %vm518_vm3, %v507_v41, %v517_v42  ;;  %1706 = vmatmul.msk.f32.gmra.mxu2 %vm407_vm2, %v406_v43  ;;  %1711 = vmatmul.msk.f32.gmra.mxu3 %vm407_vm2, %v406_v43 }
  0xc4   : > { %525 = vst.msk [vmem:[#allocation3] sm:$0x3] %vm523_vm4, %v519_v44 }
  0xc5   : > { %1713 = vmatmul.msk.f32.gmra.mxu0 %vm359_vm0, %v548_v51  ;;  %1717 = vmatmul.msk.f32.gmra.mxu1 %vm359_vm0, %v548_v51 }
  0xcb   : > { %v654_v34 = vld [vmem:[#allocation3] sm:$0x3] }
  0xcc   : > { %v2431_v35 = vperm.slane %v654_v34, 0  ;;  %v2433_v36 = vperm.slane %v654_v34, 1 }
  0xcd   : > { %1714 = vmatmul.msk.f32.gmra.mxu0 %vm359_vm0, %v549_v53  ;;  %1718 = vmatmul.msk.f32.gmra.mxu1 %vm359_vm0, %v549_v53 }
  0xd5   : > { %1715 = vmatmul.msk.f32.gmra.mxu0 %vm359_vm0, %v550_v55  ;;  %1719 = vmatmul.msk.f32.gmra.mxu1 %vm359_vm0, %v550_v55 }
  0xfa   : > { %v668_v45 = vpop.trf.xlu0 }
 0x102   : > { %v2339_v46 = vpop.trf.xlu0 }
 0x10a   : > { %v2341_v47 = vpop.trf.xlu0 }
 0x112   : > { %v2343_v48 = vpop.trf.xlu0 }
 0x11a   : > { %v2350_v50 = vpop.trf.xlu0 }
 0x122   : > { %v2357_v52 = vpop.trf.xlu0 }
 0x12a   : > { %v674_v54 = vpop.trf.xlu0 }
 0x131   : > { %v444_v56 = vpop.f32.mrf.mxu0  ;;  %v473_v57 = vpop.f32.mrf.mxu1 }
 0x132   : > { %v485_v58 = vpack.c.bf16 %v473_v57, %v444_v56  ;;  %v2369_v59 = vpop.trf.xlu0 }
 0x134   : > { %489 = vst [vmem:[#allocation2] sm:$0xff] %v485_v58 }
 0x136   : > { %v447_v60 = vpop.f32.mrf.mxu2  ;;  %v476_v61 = vpop.f32.mrf.mxu3 }
 0x137   : > { %v486_v62 = vpack.c.bf16 %v476_v61, %v447_v60 }
 0x139   : > { %490 = vst [vmem:[#allocation2 + $0x8] sm:$0xff] %v486_v62 }
 0x13a   : > { %v676_v63 = vpop.trf.xlu0  ;;  %v2403_v24 = vpop.f32.mrf.mxu0 }
 0x13b   : > { %v1722_v14 = vld [vmem:[#allocation2] sm:$0xf]  ;;  %v1774_v16 = vld [vmem:[#allocation2 + $0x4] sm:$0xf]  ;;  %3447 = vst [vmem:[#allocation14_spill] sm:$0xff] %v2403_v24  ;;  %v2405_v25 = vpop.f32.mrf.mxu1 }
 0x13c   : > { %3448 = vst [vmem:[#allocation15_spill] sm:$0xff] %v2405_v25 }
 0x13e   : > { %v450_v0 = vpop.f32.mrf.mxu2  ;;  %v479_v1 = vpop.f32.mrf.mxu3 }
 0x13f   : > { %v487_v2 = vpack.c.bf16 %v479_v1, %v450_v0 }
 0x140   : > { %v1775_v15 = vld [vmem:[#allocation2 + $0x4] sm:$0xf0]  ;;  %v1724_v17 = vld [vmem:[#allocation2 + $0x8] sm:$0xf0] }
 0x141   : > { %491 = vst [vmem:[#allocation2 + $0x10] sm:$0xff] %v487_v2  ;;  %v1723_v18 = vor.u32 %v1775_v15, %v1722_v14  ;;  %v1727_v19 = vor.u32 %v1774_v16, %v1724_v17 }
 0x142   : > { %v677_v3 = vpop.trf.xlu0  ;;  %v2407_v26 = vpop.f32.mrf.mxu0 }
 0x143   : > { %3449 = vst [vmem:[#allocation16_spill] sm:$0xff] %v2407_v26  ;;  %v2411_v27 = vpop.f32.mrf.mxu1 }
 0x144   : > { %3450 = vst [vmem:[#allocation17_spill] sm:$0xff] %v2411_v27 }
 0x146   : > { %v453_v4 = vpop.f32.mrf.mxu2  ;;  %v482_v5 = vpop.f32.mrf.mxu3 }
 0x147   : > { %v488_v6 = vpack.c.bf16 %v482_v5, %v453_v4 }
 0x148   : > { %v1730_v7 = vld [vmem:[#allocation2 + $0x10] sm:$0xf]  ;;  %v1776_v10 = vld [vmem:[#allocation2 + $0x14] sm:$0xf] }
 0x149   : > { %492 = vst [vmem:[#allocation2 + $0x18] sm:$0xff] %v488_v6 }
 0x14a   : > { %v678_v8 = vpop.trf.xlu0  ;;  %v2415_v28 = vpop.f32.mrf.mxu0 }
 0x14b   : > { %3451 = vst [vmem:[#allocation18_spill] sm:$0xff] %v2415_v28  ;;  %v2417_v29 = vpop.f32.mrf.mxu1 }
 0x14c   : > { %3452 = vst [vmem:[#allocation19_spill] sm:$0xff] %v2417_v29 }
 0x150   : > { %v1777_v9 = vld [vmem:[#allocation2 + $0x14] sm:$0xf0]  ;;  %v1732_v11 = vld [vmem:[#allocation2 + $0x18] sm:$0xf0] }
 0x151   : > { %v1731_v12 = vor.u32 %v1777_v9, %v1730_v7  ;;  %v1735_v13 = vor.u32 %v1776_v10, %v1732_v11 }
 0x152   : > { %v679_v20 = vpop.trf.xlu0  ;;  %v2421_v30 = vpop.f32.mrf.mxu0 }
 0x153   : > { %758 = vmatpush.bf16.msrb.mxu0 %v1731_v12  ;;  %1781 = vmatpush.bf16.msrb.mxu2 %v1731_v12  ;;  %3453 = vst [vmem:[#allocation20_spill] sm:$0xff] %v2421_v30  ;;  %v2423_v31 = vpop.f32.mrf.mxu1 }
 0x154   : > { %847 = vmatpush.bf16.msrb.mxu1 %v1735_v13  ;;  %1783 = vmatpush.bf16.msrb.mxu3 %v1735_v13  ;;  %3454 = vst [vmem:[#allocation21_spill] sm:$0xff] %v2423_v31 }
 0x157   : > { %759 = vmatpush.bf16.msrb.mxu0 %v1723_v18  ;;  %1782 = vmatpush.bf16.msrb.mxu2 %v1723_v18 }
 0x158   : > { %848 = vmatpush.bf16.msrb.mxu1 %v1727_v19  ;;  %1784 = vmatpush.bf16.msrb.mxu3 %v1727_v19 }
 0x15a   : > { %1736 = vmatmul.msk.bf16.vlgmr.msrb.gmra.mxu0 %vm359_vm0, %v668_v45  ;;  %1741 = vmatmul.msk.bf16.vlgmr.msrb.gmra.mxu2 %vm359_vm0, %v678_v8  ;;  %v680_v21 = vpop.trf.xlu0 }
 0x15b   : > { %1752 = vmatmul.msk.bf16.vlgmr.msrb.gmra.mxu1 %vm359_vm0, %v668_v45  ;;  %1757 = vmatmul.msk.bf16.vlgmr.msrb.gmra.mxu3 %vm359_vm0, %v678_v8 }
 0x162   : > { %v681_v22 = vpop.trf.xlu0 }
 0x16a   : > { %1737 = vmatmul.msk.bf16.gmra.mxu0 %vm359_vm0, %v2341_v47  ;;  %1742 = vmatmul.msk.bf16.gmra.mxu2 %vm359_vm0, %v680_v21  ;;  %v682_v23 = vpop.trf.xlu0 }
 0x16b   : > { %1753 = vmatmul.msk.bf16.gmra.mxu1 %vm359_vm0, %v2341_v47  ;;  %1758 = vmatmul.msk.bf16.gmra.mxu3 %vm359_vm0, %v680_v21 }
 0x17a   : > { %1738 = vmatmul.msk.bf16.gmra.mxu0 %vm359_vm0, %v2350_v50  ;;  %1743 = vmatmul.msk.bf16.gmra.mxu2 %vm359_vm0, %v682_v23 }
 0x17b   : > { %1754 = vmatmul.msk.bf16.gmra.mxu1 %vm359_vm0, %v2350_v50  ;;  %1759 = vmatmul.msk.bf16.gmra.mxu3 %vm359_vm0, %v682_v23 }
 0x18a   : > { %1739 = vmatmul.msk.bf16.gmra.mxu0 %vm359_vm0, %v674_v54  ;;  %1744 = vmatmul.msk.bf16.gmra.mxu2 %vm359_vm0, %v2339_v46 }
 0x18b   : > { %1755 = vmatmul.msk.bf16.gmra.mxu1 %vm359_vm0, %v674_v54  ;;  %1760 = vmatmul.msk.bf16.gmra.mxu3 %vm359_vm0, %v2339_v46 }
 0x19a   : > { %1740 = vmatmul.msk.bf16.gmra.mxu0 %vm359_vm0, %v676_v63  ;;  %1745 = vmatmul.msk.bf16.gmra.mxu2 %vm359_vm0, %v2343_v48 }
 0x19b   : > { %1756 = vmatmul.msk.bf16.gmra.mxu1 %vm359_vm0, %v676_v63  ;;  %1761 = vmatmul.msk.bf16.gmra.mxu3 %vm359_vm0, %v2343_v48  ;;  %v683_v63 = vpop.trf.xlu0 }
 0x1aa   : > { %1746 = vmatmul.msk.bf16.gmra.mxu2 %vm359_vm0, %v2357_v52 }
 0x1ab   : > { %1762 = vmatmul.msk.bf16.gmra.mxu3 %vm359_vm0, %v2357_v52 }
 0x1ba   : > { %1747 = vmatmul.msk.bf16.gmra.mxu2 %vm359_vm0, %v2369_v59 }
 0x1bb   : > { %1763 = vmatmul.msk.bf16.gmra.mxu3 %vm359_vm0, %v2369_v59 }
 0x1ca   : > { %1748 = vmatmul.msk.bf16.gmra.mxu2 %vm359_vm0, %v677_v3 }
 0x1cb   : > { %1764 = vmatmul.msk.bf16.gmra.mxu3 %vm359_vm0, %v677_v3 }
 0x1d7   : > { %v2425_v32 = vpop.f32.mrf.mxu0 }
 0x1d8   : > { %v2427_v33 = vpop.f32.mrf.mxu1 }
 0x1da   : > { %1749 = vmatmul.msk.bf16.gmra.mxu2 %vm359_vm0, %v679_v20 }
 0x1db   : > { %1765 = vmatmul.msk.bf16.gmra.mxu3 %vm359_vm0, %v679_v20 }
 0x1dd   : > { %v786_v37 = vpop.f32.mrf.mxu2 }
 0x1de   : > { %v2436_v38 = vadd.f32 %v786_v37, %v2431_v35  ;;  %v875_v39 = vpop.f32.mrf.mxu3 }
 0x1df   : > { %v2439_v40 = vadd.f32 %v875_v39, %v2433_v36  ;;  %v2441_v41 = vpop.f32.mrf.mxu0 }
 0x1e0   : > { %v2443_v42 = vpop.f32.mrf.mxu1 }
 0x1e1   : > { %v960_v43 = vmax.f32 %v2436_v38, %v2439_v40 }
 0x1e3   : > { %961 = vmax.xlane.f32.xlu1 %v960_v43 }
 0x1e5   : > { %v788_v44 = vpop.f32.mrf.mxu2 }
 0x1e6   : > { %v2448_v45 = vadd.f32 %v788_v44, %v2431_v35  ;;  %v877_v46 = vpop.f32.mrf.mxu3 }
 0x1e7   : > { %v2451_v47 = vadd.f32 %v877_v46, %v2433_v36  ;;  %v2453_v48 = vpop.f32.mrf.mxu0 }
 0x1e8   : > { %v2455_v49 = vpop.f32.mrf.mxu1 }
 0x1e9   : > { %v963_v50 = vmax.f32 %v2448_v45, %v2451_v47 }
 0x1ea   : > { %1750 = vmatmul.msk.bf16.gmra.mxu2 %vm359_vm0, %v681_v22 }
 0x1eb   : > { %1766 = vmatmul.msk.bf16.gmra.mxu3 %vm359_vm0, %v681_v22  ;;  %964 = vmax.xlane.f32.xlu2 %v963_v50 }
 0x1ed   : > { %v791_v51 = vpop.f32.mrf.mxu2 }
 0x1ee   : > { %v2462_v52 = vadd.f32 %v791_v51, %v2431_v35  ;;  %v880_v53 = vpop.f32.mrf.mxu3 }
 0x1ef   : > { %v2465_v54 = vadd.f32 %v880_v53, %v2433_v36  ;;  %v2467_v55 = vpop.f32.mrf.mxu0 }
 0x1f0   : > { %v2469_v56 = vpop.f32.mrf.mxu1 }
 0x1f1   : > { %v966_v57 = vmax.f32 %v2462_v52, %v2465_v54 }
 0x1f3   : > { %967 = vmax.xlane.f32.xlu2 %v966_v57 }
 0x1f5   : > { %v793_v58 = vpop.f32.mrf.mxu2 }
 0x1f6   : > { %v2474_v59 = vadd.f32 %v793_v58, %v2431_v35  ;;  %v882_v60 = vpop.f32.mrf.mxu3 }
 0x1f7   : > { %v2477_v61 = vadd.f32 %v882_v60, %v2433_v36  ;;  %v2479_v62 = vpop.f32.mrf.mxu0 }
 0x1f8   : > { %v2481_v0 = vpop.f32.mrf.mxu1 }
 0x1f9   : > { %v969_v1 = vmax.f32 %v2474_v59, %v2477_v61 }
 0x1fa   : > { %1751 = vmatmul.msk.bf16.gmra.mxu2 %vm359_vm0, %v683_v63 }
 0x1fb   : > { %1767 = vmatmul.msk.bf16.gmra.mxu3 %vm359_vm0, %v683_v63  ;;  %970 = vmax.xlane.f32.xlu2 %v969_v1 }
 0x1fd   : > { %v796_v2 = vpop.f32.mrf.mxu2 }
 0x1fe   : > { %v2488_v3 = vadd.f32 %v796_v2, %v2431_v35  ;;  %v885_v4 = vpop.f32.mrf.mxu3 }
 0x1ff   : > { %v2491_v5 = vadd.f32 %v885_v4, %v2433_v36  ;;  %v2493_v6 = vpop.f32.mrf.mxu0 }
 0x200   : > { %v2495_v7 = vpop.f32.mrf.mxu1 }
 0x201   : > { %v972_v8 = vmax.f32 %v2488_v3, %v2491_v5 }
 0x203   : > { %973 = vmax.xlane.f32.xlu1 %v972_v8 }
 0x205   : > { %v798_v9 = vpop.f32.mrf.mxu2 }
 0x206   : > { %v2500_v10 = vadd.f32 %v798_v9, %v2431_v35  ;;  %v887_v11 = vpop.f32.mrf.mxu3 }
 0x207   : > { %v2503_v12 = vadd.f32 %v887_v11, %v2433_v36  ;;  %v776_v13 = vpop.f32.mrf.mxu0 }
 0x208   : > { %v865_v14 = vpop.f32.mrf.mxu1 }
 0x209   : > { %v975_v15 = vmax.f32 %v2500_v10, %v2503_v12  ;;  %v2551_v31 = vadd.f32 %v865_v14, %v2433_v36 }
 0x20b   : > { %976 = vmax.xlane.f32.xlu2 %v975_v15  ;;  %3459 = vst [vmem:[#allocation26_spill] sm:$0xff] %v2551_v31 }
 0x20d   : > { %v2507_v16 = vpop.f32.mrf.mxu2 }
 0x20e   : > { %v2509_v17 = vpop.f32.mrf.mxu3 }
 0x20f   : > { %v778_v18 = vpop.f32.mrf.mxu0 }
 0x210   : > { %v867_v19 = vpop.f32.mrf.mxu1 }
 0x211   : > { %v2567_v14 = vadd.f32 %v867_v19, %v2433_v36 }
 0x215   : > { %v2511_v20 = vpop.f32.mrf.mxu2 }
 0x216   : > { %v2513_v21 = vpop.f32.mrf.mxu3 }
 0x217   : > { %v781_v22 = vpop.f32.mrf.mxu0 }
 0x218   : > { %v2516_v23 = vadd.f32 %v781_v22, %v2431_v35  ;;  %v870_v34 = vpop.f32.mrf.mxu1 }
 0x219   : > { %v2519_v37 = vadd.f32 %v870_v34, %v2433_v36 }
 0x21a   : > { %3455 = vst [vmem:[#allocation22_spill] sm:$0xff] %v2516_v23 }
 0x21b   : > { %3456 = vst [vmem:[#allocation23_spill] sm:$0xff] %v2519_v37  ;;  %v954_v39 = vmax.f32 %v2516_v23, %v2519_v37 }
 0x21d   : > { %955 = vmax.xlane.f32.xlu2 %v954_v39  ;;  %v2523_v43 = vpop.f32.mrf.mxu2 }
 0x21e   : > { %v2525_v44 = vpop.f32.mrf.mxu3 }
 0x21f   : > { %v783_v46 = vpop.f32.mrf.mxu0 }
 0x220   : > { %v2528_v50 = vadd.f32 %v783_v46, %v2431_v35  ;;  %v872_v51 = vpop.f32.mrf.mxu1 }
 0x221   : > { %v2531_v53 = vadd.f32 %v872_v51, %v2433_v36 }
 0x223   : > { %v957_v57 = vmax.f32 %v2528_v50, %v2531_v53 }
 0x225   : > { %958 = vmax.xlane.f32.xlu1 %v957_v57  ;;  %v2535_v58 = vpop.f32.mrf.mxu2  ;;  %v2548_v57 = vadd.f32 %v776_v13, %v2431_v35  ;;  %v2564_v13 = vadd.f32 %v778_v18, %v2431_v35 }
 0x226   : > { %v2537_v60 = vpop.f32.mrf.mxu3 }
 0x227   : > { %v951_v19 = vmax.f32 %v2564_v13, %v2567_v14 }
 0x22d   : > { %v811_v63 = vpop.f32.mrf.mxu2 }
 0x22e   : > { %v900_v1 = vpop.f32.mrf.mxu3 }
 0x235   : > { %v813_v2 = vpop.f32.mrf.mxu2 }
 0x236   : > { %v902_v4 = vpop.f32.mrf.mxu3 }
 0x23d   : > { %v816_v8 = vpop.f32.mrf.mxu2 }
 0x23e   : > { %v905_v9 = vpop.f32.mrf.mxu3  ;;  %v2570_v25 = vadd.f32 %v816_v8, %v2431_v35 }
 0x240   : > { %3460 = vst [vmem:[#allocation27_spill] sm:$0xff] %v2570_v25 }
 0x245   : > { %v818_v11 = vpop.f32.mrf.mxu2 }
 0x246   : > { %v907_v15 = vpop.f32.mrf.mxu3 }
 0x24d   : > { %v821_v22 = vpop.f32.mrf.mxu2 }
 0x24e   : > { %v2540_v34 = vadd.f32 %v821_v22, %v2431_v35  ;;  %v910_v39 = vpop.f32.mrf.mxu3 }
 0x24f   : > { %v2543_v46 = vadd.f32 %v910_v39, %v2433_v36 }
 0x250   : > { %3457 = vst [vmem:[#allocation24_spill] sm:$0xff] %v2540_v34 }
 0x251   : > { %3458 = vst [vmem:[#allocation25_spill] sm:$0xff] %v2543_v46  ;;  %v1002_v51 = vmax.f32 %v2540_v34, %v2543_v46 }
 0x253   : > { %1003 = vmax.xlane.f32.xlu2 %v1002_v51  ;;  %v948_v51 = vmax.f32 %v2548_v57, %v2551_v31 }
 0x255   : > { %v823_v29 = vpop.f32.mrf.mxu2 }
 0x256   : > { %v2554_v28 = vadd.f32 %v823_v29, %v2431_v35  ;;  %v912_v22 = vpop.f32.mrf.mxu3 }
 0x257   : > { %v2557_v30 = vadd.f32 %v912_v22, %v2433_v36  ;;  %v2573_v22 = vadd.f32 %v905_v9, %v2433_v36  ;;  %v2588_v9 = vadd.f32 %v818_v11, %v2431_v35  ;;  %v2607_v11 = vadd.f32 %v2493_v6, %v2431_v35  ;;  %v551_v6 = vld [vmem:[%s3392_s6] sm:$0xff] }
 0x259   : > { %v1005_v39 = vmax.f32 %v2554_v28, %v2557_v30  ;;  %3461 = vst [vmem:[#allocation28_spill] sm:$0xff] %v2573_v22  ;;  %v996_v8 = vmax.f32 %v2570_v25, %v2573_v22 }
 0x25b   : > { %1006 = vmax.xlane.f32.xlu1 %v1005_v39  ;;  %949 = vmax.xlane.f32.xlu2 %v948_v51  ;;  %v2591_v51 = vadd.f32 %v907_v15, %v2433_v36  ;;  %v2614_v15 = vadd.f32 %v811_v63, %v2431_v35  ;;  %v2630_v63 = vadd.f32 %v902_v4, %v2433_v36 }
 0x25c   : > { %v2657_v4 = vadd.f32 %v2523_v43, %v2431_v35  ;;  %v2673_v43 = vadd.f32 %v2537_v60, %v2433_v36  ;;  %v2701_v60 = vadd.f32 %v2509_v17, %v2433_v36 }
 0x25d   : > { %v826_v29 = vpop.f32.mrf.mxu2  ;;  %v999_v26 = vmax.f32 %v2588_v9, %v2591_v51  ;;  %3464 = vst [vmem:[#allocation31_spill] sm:$0xff] %v2614_v15 }
 0x25e   : > { %v2576_v27 = vadd.f32 %v826_v29, %v2431_v35  ;;  %v915_v24 = vpop.f32.mrf.mxu3  ;;  %v2599_v29 = vadd.f32 %v2481_v0, %v2433_v36  ;;  %v2617_v0 = vadd.f32 %v900_v1, %v2433_v36  ;;  %v2634_v1 = vadd.f32 %v2453_v48, %v2431_v35  ;;  %3466 = vst [vmem:[#allocation33_spill] sm:$0xff] %v2657_v4 }
 0x25f   : > { %v2579_v39 = vadd.f32 %v915_v24, %v2433_v36  ;;  %v2595_v24 = vadd.f32 %v2479_v62, %v2431_v35  ;;  %v2611_v62 = vadd.f32 %v2495_v7, %v2433_v36  ;;  %v2627_v7 = vadd.f32 %v813_v2, %v2431_v35  ;;  %v554_v2 = vld [vmem:[%s3392_s6 + $0x18] sm:$0xff]  ;;  %3471 = vst [vmem:[#allocation38_spill] sm:$0xff] %v2701_v60 }
 0x260   : > { %3462 = vst [vmem:[#allocation29_spill] sm:$0xff] %v2576_v27  ;;  %v2649_v48 = vadd.f32 %v2467_v55, %v2431_v35 }
 0x261   : > { %3463 = vst [vmem:[#allocation30_spill] sm:$0xff] %v2579_v39  ;;  %v1008_v18 = vmax.f32 %v2576_v27, %v2579_v39 }
 0x262   : > { %3465 = vst [vmem:[#allocation32_spill] sm:$0xff] %v2617_v0 }
 0x263   : > { %1009 = vmax.xlane.f32.xlu0 %v1008_v18  ;;  %952 = vmax.xlane.f32.xlu1 %v951_v19  ;;  %v942_v18 = vmax.f32 %v2595_v24, %v2599_v29  ;;  %v945_v19 = vmax.f32 %v2607_v11, %v2611_v62 }
 0x264   : > { %997 = vmax.xlane.f32.xlu2 %v996_v8  ;;  %v2638_v8 = vadd.f32 %v2455_v49, %v2433_v36  ;;  %v2653_v49 = vadd.f32 %v2469_v56, %v2433_v36  ;;  %v2669_v56 = vadd.f32 %v2535_v58, %v2431_v35  ;;  %v2689_v58 = vadd.f32 %v2441_v41, %v2431_v35  ;;  %v965_v41 = vpop.xlane.xlu2 %964 }
 0x265   : > { %v1048_v17 = vsub.f32 %v2448_v45, %v965_v41 }
 0x266   : > { %3468 = vst [vmem:[#allocation35_spill] sm:$0xff] %v2689_v58 }
 0x26b   : > { %1000 = vmax.xlane.f32.xlu1 %v999_v26  ;;  %v990_v26 = vmax.f32 %v2614_v15, %v2617_v0 }
 0x26c   : > { %943 = vmax.xlane.f32.xlu2 %v942_v18  ;;  %v993_v18 = vmax.f32 %v2627_v7, %v2630_v63 }
 0x273   : > { %946 = vmax.xlane.f32.xlu1 %v945_v19  ;;  %v936_v19 = vmax.f32 %v2634_v1, %v2638_v8 }
 0x274   : > { %991 = vmax.xlane.f32.xlu2 %v990_v26  ;;  %v2661_v26 = vadd.f32 %v2525_v44, %v2433_v36  ;;  %v2677_v44 = vadd.f32 %v2425_v32, %v2431_v35  ;;  %v2693_v32 = vadd.f32 %v2443_v42, %v2433_v36  ;;  %v2709_v42 = vadd.f32 %v2511_v20, %v2431_v35 }
 0x276   : > { %3467 = vst [vmem:[#allocation34_spill] sm:$0xff] %v2661_v26  ;;  %v984_v55 = vmax.f32 %v2657_v4, %v2661_v26 }
 0x277   : > { %557 = vperm.xlu0 %1852, %v551_v6   ;;  %v939_v6 = vmax.f32 %v2649_v48, %v2653_v49  ;;  %3469 = vst [vmem:[#allocation36_spill] sm:$0xff] %v2693_v32 }
 0x278   : > { %3472 = vst [vmem:[#allocation39_spill] sm:$0xff] %v2709_v42 }
 0x27b   : > { %994 = vmax.xlane.f32.xlu1 %v993_v18  ;;  %v2681_v18 = vadd.f32 %v2427_v33, %v2433_v36  ;;  %v2697_v33 = vadd.f32 %v2507_v16, %v2431_v35  ;;  %v2713_v16 = vadd.f32 %v2513_v21, %v2433_v36 }
 0x27c   : > { %937 = vmax.xlane.f32.xlu2 %v936_v19  ;;  %v987_v19 = vmax.f32 %v2669_v56, %v2673_v43 }
 0x27d   : > { %3470 = vst [vmem:[#allocation37_spill] sm:$0xff] %v2697_v33 }
 0x27e   : > { %3473 = vst [vmem:[#allocation40_spill] sm:$0xff] %v2713_v16 }
 0x27f   : > { %572 = vperm.xlu0 %1852, %v554_v2   ;;  %v930_v2 = vmax.f32 %v2677_v44, %v2681_v18 }
 0x283   : > { %940 = vmax.xlane.f32.xlu1 %v939_v6  ;;  %v933_v6 = vmax.f32 %v2689_v58, %v2693_v32  ;;  %v828_v32 = vpop.f32.mrf.mxu2  ;;  %v917_v58 = vpop.f32.mrf.mxu3 }
 0x284   : > { %985 = vmax.xlane.f32.xlu2 %v984_v55  ;;  %v978_v55 = vmax.f32 %v2697_v33, %v2701_v60  ;;  %v2720_v60 = vadd.f32 %v828_v32, %v2431_v35  ;;  %v2723_v20 = vadd.f32 %v917_v58, %v2433_v36 }
 0x286   : > { %v1011_v45 = vmax.f32 %v2720_v60, %v2723_v20 }
 0x28b   : > { %988 = vmax.xlane.f32.xlu1 %v987_v19  ;;  %v1049_v19 = vsub.f32 %v2451_v47, %v965_v41  ;;  %v2727_v47 = vpop.xlane.xlu2 %967 }
 0x28c   : > { %931 = vmax.xlane.f32.xlu2 %v930_v2  ;;  %v981_v2 = vmax.f32 %v2709_v42, %v2713_v16 }
 0x293   : > { %934 = vmax.xlane.f32.xlu1 %v933_v6  ;;  %v1134_v6 = vmul.f32 1.442695, %v1048_v17  ;;  %v971_v32 = vpop.xlane.xlu2 %970 }
 0x294   : > { %979 = vmax.xlane.f32.xlu2 %v978_v55  ;;  %v1136_v55 = vmul.f32 1.442695, %v1049_v19  ;;  %v962_v19 = vpop.xlane.xlu1 %961  ;;  %v1052_v15 = vsub.f32 %v2474_v59, %v971_v32  ;;  %v1053_v4 = vsub.f32 %v2477_v61, %v971_v32 }
 0x295   : > { %1855 = vpow2.f32 %v1134_v6 }
 0x296   : > { %1857 = vpow2.f32 %v1136_v55  ;;  %v1142_v37 = vmul.f32 1.442695, %v1052_v15  ;;  %v1046_v15 = vsub.f32 %v2436_v38, %v962_v19 }
 0x29b   : > { %982 = vmax.xlane.f32.xlu1 %v981_v2  ;;  %v2729_v21 = vpop.eup %1855  ;;  %v2735_v58 = vpop.xlane.xlu2 %976 }
 0x29c   : > { %3474 = vst [vmem:[#allocation41_spill] sm:$0xff] %v2729_v21  ;;  %v2731_v41 = vpop.eup %1857  ;;  %v2737_v2 = vpop.xlane.xlu1 %973  ;;  %v1057_v38 = vsub.f32 %v2503_v12, %v2735_v58 }
 0x29d   : > { %3475 = vst [vmem:[#allocation42_spill] sm:$0xff] %v2731_v41  ;;  %v1251_v17 = vadd.f32 %v2731_v41, %v2729_v21 }
 0x29e   : > { %v1152_v12 = vmul.f32 1.442695, %v1057_v38  ;;  %v831_v38 = vpop.f32.mrf.mxu2 }
 0x2a3   : > { %1012 = vmax.xlane.f32.xlu1 %v1011_v45  ;;  %v2739_v6 = vpop.xlane.xlu2 %955 }
 0x2a4   : > { %3476 = vst [vmem:[#allocation43_spill] sm:$0xff] %v2739_v6  ;;  %v2741_v55 = vpop.xlane.xlu1 %958 }
 0x2ab   : > { %1252 = vadd.xlane.f32.xlu1 %v1251_v17 }
 0x2c6   : > { %v2743_v45 = vpop.xlane.xlu2 %1003 }
 0x2c7   : > { %3477 = vst [vmem:[#allocation44_spill] sm:$0xff] %v2743_v45 }
 0x2ce   : > { %v2745_v16 = vpop.xlane.xlu1 %1006  ;;  %v2747_v42 = vpop.xlane.xlu2 %949 }
 0x2d6   : > { %v2749_v33 = vpop.xlane.xlu1 %952 }
 0x2d7   : > { %v2751_v21 = vpop.xlane.xlu2 %997 }
 0x2d8   : > { %3478 = vst [vmem:[#allocation45_spill] sm:$0xff] %v2751_v21 }
 0x2de   : > { %v2753_v17 = vpop.xlane.xlu1 %1000 }
 0x2df   : > { %v2755_v41 = vpop.xlane.xlu2 %943 }
 0x2e6   : > { %v947_v39 = vpop.xlane.xlu1 %946 }
 0x2e7   : > { %v2757_v27 = vpop.xlane.xlu2 %991 }
 0x2e8   : > { %3479 = vst [vmem:[#allocation46_spill] sm:$0xff] %v2757_v27  ;;  %v1144_v27 = vmul.f32 1.442695, %v1053_v4 }
 0x2ee   : > { %v2759_v46 = vpop.xlane.xlu1 %994 }
 0x2ef   : > { %v938_v34 = vpop.xlane.xlu2 %937 }
 0x2f0   : > { %v1031_v32 = vsub.f32 %v2638_v8, %v938_v34  ;;  %v1041_v8 = vsub.f32 %v2567_v14, %v2749_v33  ;;  %v1044_v14 = vsub.f32 %v2528_v50, %v2741_v55 }
 0x2f6   : > { %v941_v22 = vpop.xlane.xlu1 %940 }
 0x2f7   : > { %v1032_v45 = vsub.f32 %v2649_v48, %v941_v22  ;;  %v1033_v25 = vsub.f32 %v2653_v49, %v941_v22  ;;  %v2763_v0 = vpop.xlane.xlu2 %985  ;;  %v1036_v22 = vsub.f32 %v2607_v11, %v947_v39 }
 0x2f9   : > { %v1102_v21 = vmul.f32 1.442695, %v1032_v45  ;;  %v1104_v26 = vmul.f32 1.442695, %v1033_v25  ;;  %v1037_v25 = vsub.f32 %v2611_v62, %v947_v39  ;;  %v1030_v62 = vsub.f32 %v2634_v1, %v938_v34 }
 0x2fa   : > { %v1100_v1 = vmul.f32 1.442695, %v1031_v32 }
 0x2fb   : > { %1859 = vpow2.f32 %v1102_v21 }
 0x2fc   : > { %1861 = vpow2.f32 %v1104_v26  ;;  %v1047_v26 = vsub.f32 %v2439_v40, %v962_v19 }
 0x2fd   : > { %1863 = vpow2.f32 %v1142_v37  ;;  %v1112_v37 = vmul.f32 1.442695, %v1037_v25  ;;  %v1040_v25 = vsub.f32 %v2564_v13, %v2749_v33 }
 0x2fe   : > { %1865 = vpow2.f32 %v1144_v27  ;;  %v1132_v39 = vmul.f32 1.442695, %v1047_v26 }
 0x2ff   : > { %v932_v23 = vpop.xlane.xlu2 %931 }
 0x300   : > { %v1026_v6 = vsub.f32 %v2677_v44, %v932_v23  ;;  %v1027_v31 = vsub.f32 %v2681_v18, %v932_v23  ;;  %v1110_v23 = vmul.f32 1.442695, %v1036_v22  ;;  %v1130_v44 = vmul.f32 1.442695, %v1046_v15 }
 0x301   : > { %v2769_v48 = vpop.eup %1859 }
 0x302   : > { %v2772_v49 = vpop.eup %1861  ;;  %v1090_v59 = vmul.f32 1.442695, %v1026_v6  ;;  %v1092_v61 = vmul.f32 1.442695, %v1027_v31  ;;  %v1056_v31 = vsub.f32 %v2500_v10, %v2735_v58  ;;  %v1098_v6 = vmul.f32 1.442695, %v1030_v62 }
 0x303   : > { %v1227_v4 = vadd.f32 %v2772_v49, %v2769_v48  ;;  %v2779_v11 = vpop.eup %1863  ;;  %v1126_v62 = vmul.f32 1.442695, %v1044_v14  ;;  %v1069_v14 = vsub.f32 %v2630_v63, %v2759_v46 }
 0x304   : > { %1867 = vpow2.f32 %v1090_v59  ;;  %v2781_v27 = vpop.eup %1865  ;;  %v1150_v19 = vmul.f32 1.442695, %v1056_v31  ;;  %v1051_v31 = vsub.f32 %v2465_v54, %v2727_v47 }
 0x305   : > { %1228 = vadd.xlane.f32.xlu1 %v1227_v4  ;;  %1869 = vpow2.f32 %v1092_v61  ;;  %v1257_v18 = vadd.f32 %v2781_v27, %v2779_v11  ;;  %v1118_v61 = vmul.f32 1.442695, %v1040_v25  ;;  %v1120_v4 = vmul.f32 1.442695, %v1041_v8 }
 0x306   : > { %1871 = vpow2.f32 %v1110_v23 }
 0x307   : > { %1873 = vpow2.f32 %v1112_v37  ;;  %v1045_v37 = vsub.f32 %v2531_v53, %v2741_v55 }
 0x308   : > { %1875 = vpow2.f32 %v1130_v44  ;;  %v1050_v44 = vsub.f32 %v2462_v52, %v2727_v47 }
 0x309   : > { %1877 = vpow2.f32 %v1132_v39  ;;  %v1128_v32 = vmul.f32 1.442695, %v1045_v37 }
 0x30a   : > { %v2787_v40 = vpop.eup %1867  ;;  %1879 = vpow2.f32 %v1150_v19  ;;  %v989_v19 = vpop.xlane.xlu1 %988  ;;  %v1138_v55 = vmul.f32 1.442695, %v1050_v44  ;;  %v1034_v44 = vsub.f32 %v2595_v24, %v2755_v41 }
 0x30b   : > { %v2792_v21 = vpop.eup %1869  ;;  %1881 = vpow2.f32 %v1152_v12  ;;  %v2838_v12 = vadd.f32 %v831_v38, %v2431_v35  ;;  %v1064_v47 = vsub.f32 %v2669_v56, %v989_v19 }
 0x30c   : > { %3480 = vst [vmem:[#allocation47_spill] sm:$0xff] %v2792_v21  ;;  %v1218_v10 = vadd.f32 %v2792_v21, %v2787_v40  ;;  %v2797_v58 = vpop.eup %1871  ;;  %1883 = vpow2.f32 %v1098_v6  ;;  %v1065_v6 = vsub.f32 %v2673_v43, %v989_v19  ;;  %v1068_v43 = vsub.f32 %v2627_v7, %v2759_v46 }
 0x30d   : > { %1258 = vadd.xlane.f32.xlu1 %v1257_v18  ;;  %v2799_v45 = vpop.eup %1873  ;;  %1885 = vpow2.f32 %v1100_v1  ;;  %v920_v18 = vpop.f32.mrf.mxu3  ;;  %v1166_v25 = vmul.f32 1.442695, %v1064_v47  ;;  %v1176_v46 = vmul.f32 1.442695, %v1069_v14  ;;  %v1054_v14 = vsub.f32 %v2488_v3, %v2737_v2 }
 0x30e   : > { %1219 = vadd.xlane.f32.xlu2 %v1218_v10  ;;  %v2801_v22 = vpop.eup %1875  ;;  %v1233_v59 = vadd.f32 %v2799_v45, %v2797_v58  ;;  %1887 = vpow2.f32 %v1118_v61  ;;  %v1140_v10 = vmul.f32 1.442695, %v1051_v31  ;;  %v2841_v54 = vadd.f32 %v920_v18, %v2433_v36 }
 0x30f   : > { %v2805_v34 = vpop.eup %1877  ;;  %1889 = vpow2.f32 %v1120_v4  ;;  %v1035_v31 = vsub.f32 %v2599_v29, %v2755_v41  ;;  %v1174_v38 = vmul.f32 1.442695, %v1068_v43  ;;  %v1106_v18 = vmul.f32 1.442695, %v1034_v44 }
 0x310   : > { %v1248_v15 = vadd.f32 %v2805_v34, %v2801_v22  ;;  %v2813_v26 = vpop.eup %1879  ;;  %1891 = vpow2.f32 %v1126_v62  ;;  %v1014_v8 = vmax.f32 %v2838_v12, %v2841_v54  ;;  %v833_v62 = vpop.f32.mrf.mxu2  ;;  %v1072_v41 = vsub.f32 %v2588_v9, %v2753_v17 }
 0x311   : > { %v2815_v13 = vpop.eup %1881  ;;  %1893 = vpow2.f32 %v1128_v32  ;;  %v1108_v24 = vmul.f32 1.442695, %v1035_v31  ;;  %v2876_v19 = vadd.f32 %v833_v62, %v2431_v35  ;;  %v1077_v43 = vsub.f32 %v2557_v30, %v2745_v16 }
 0x312   : > { %v2817_v23 = vpop.eup %1883  ;;  %v1263_v39 = vadd.f32 %v2815_v13, %v2813_v26  ;;  %1895 = vpow2.f32 %v1138_v55  ;;  %v2861_v37 = vpop.xlane.xlu1 %934  ;;  %v1073_v55 = vsub.f32 %v2591_v51, %v2753_v17  ;;  %v1076_v17 = vsub.f32 %v2554_v28, %v2745_v16 }
 0x313   : > { %v2821_v33 = vpop.eup %1885  ;;  %1897 = vpow2.f32 %v1140_v10  ;;  %v1192_v62 = vmul.f32 1.442695, %v1077_v43  ;;  %v1146_v16 = vmul.f32 1.442695, %v1054_v14  ;;  %v3485_v14 = vld [vmem:[#allocation26_spill] sm:$0xff] }
 0x314   : > { %v1224_v50 = vadd.f32 %v2821_v33, %v2817_v23  ;;  %v2833_v53 = vpop.eup %1887  ;;  %1899 = vpow2.f32 %v1166_v25  ;;  %v1184_v25 = vmul.f32 1.442695, %v1073_v55 }
 0x315   : > { %1234 = vadd.xlane.f32.xlu1 %v1233_v59  ;;  %v2835_v52 = vpop.eup %1889  ;;  %v1168_v59 = vmul.f32 1.442695, %v1065_v6  ;;  %v1182_v6 = vmul.f32 1.442695, %v1072_v41 }
 0x316   : > { %1249 = vadd.xlane.f32.xlu2 %v1248_v15  ;;  %v1239_v1 = vadd.f32 %v2835_v52, %v2833_v53  ;;  %v2849_v61 = vpop.eup %1891 }
 0x317   : > { %v2851_v15 = vpop.eup %1893  ;;  %1901 = vpow2.f32 %v1168_v59 }
 0x318   : > { %v2853_v56 = vpop.eup %1895  ;;  %1903 = vpow2.f32 %v1174_v38  ;;  %v836_v31 = vpop.f32.mrf.mxu2  ;;  %v1190_v38 = vmul.f32 1.442695, %v1076_v17  ;;  %v1038_v17 = vsub.f32 %v2548_v57, %v2747_v42 }
 0x319   : > { %v2857_v4 = vpop.eup %1897  ;;  %1905 = vpow2.f32 %v1176_v46 }
 0x31a   : > { %v1254_v7 = vadd.f32 %v2857_v4, %v2853_v56  ;;  %v2871_v63 = vpop.eup %1899  ;;  %1907 = vpow2.f32 %v1106_v18  ;;  %v2887_v47 = vpop.xlane.xlu1 %982  ;;  %v2916_v18 = vadd.f32 %v836_v31, %v2431_v35 }
 0x31b   : > { %1909 = vpow2.f32 %v1108_v24 }
 0x31c   : > { %1911 = vpow2.f32 %v1182_v6 }
 0x31d   : > { %1264 = vadd.xlane.f32.xlu1 %v1263_v39  ;;  %v1245_v39 = vadd.f32 %v2851_v15, %v2849_v61  ;;  %v2873_v32 = vpop.eup %1901  ;;  %1913 = vpow2.f32 %v1184_v25 }
 0x31e   : > { %1225 = vadd.xlane.f32.xlu2 %v1224_v50  ;;  %v922_v50 = vpop.f32.mrf.mxu3  ;;  %v1275_v10 = vadd.f32 %v2873_v32, %v2871_v63  ;;  %1915 = vpow2.f32 %v1190_v38 }
 0x31f   : > { %v2879_v29 = vadd.f32 %v922_v50, %v2433_v36  ;;  %1917 = vpow2.f32 %v1192_v62 }
 0x320   : > { %1919 = vpow2.f32 %v1146_v16  ;;  %v838_v31 = vpop.f32.mrf.mxu2 }
 0x321   : > { %v2948_v57 = vadd.f32 %v838_v31, %v2431_v35 }
 0x322   : > { %v1013_v50 = vpop.xlane.xlu1 %1012 }
 0x323   : > { %v1081_v24 = vsub.f32 %v2723_v20, %v1013_v50 }
 0x325   : > { %1240 = vadd.xlane.f32.xlu1 %v1239_v1  ;;  %v1017_v1 = vmax.f32 %v2876_v19, %v2879_v29  ;;  %v1200_v6 = vmul.f32 1.442695, %v1081_v24 }
 0x326   : > { %1015 = vmax.xlane.f32.xlu2 %v1014_v8  ;;  %v2891_v8 = vpop.eup %1903 }
 0x327   : > { %3481 = vst [vmem:[#allocation48_spill] sm:$0xff] %v2891_v8  ;;  %v2893_v9 = vpop.eup %1905 }
 0x328   : > { %3482 = vst [vmem:[#allocation49_spill] sm:$0xff] %v2893_v9  ;;  %v2895_v51 = vpop.eup %1907  ;;  %v1281_v44 = vadd.f32 %v2893_v9, %v2891_v8 }
 0x329   : > { %v2899_v59 = vpop.eup %1909 }
 0x32a   : > { %v1230_v28 = vadd.f32 %v2899_v59, %v2895_v51  ;;  %v2911_v30 = vpop.eup %1911 }
 0x32b   : > { %v2913_v3 = vpop.eup %1913 }
 0x32c   : > { %3483 = vst [vmem:[#allocation50_spill] sm:$0xff] %v2913_v3  ;;  %v1287_v41 = vadd.f32 %v2913_v3, %v2911_v30  ;;  %v3005_v3 = vpop.xlane.xlu2 %979 }
 0x32d   : > { %1246 = vadd.xlane.f32.xlu1 %v1245_v39  ;;  %v1055_v39 = vsub.f32 %v2491_v5, %v2737_v2  ;;  %v1080_v2 = vsub.f32 %v2720_v60, %v1013_v50 }
 0x32e   : > { %1255 = vadd.xlane.f32.xlu2 %v1254_v7  ;;  %v925_v7 = vpop.f32.mrf.mxu3 }
 0x32f   : > { %v1148_v46 = vmul.f32 1.442695, %v1055_v39  ;;  %v2919_v5 = vadd.f32 %v925_v7, %v2433_v36  ;;  %v1198_v55 = vmul.f32 1.442695, %v1080_v2  ;;  %v1114_v7 = vmul.f32 1.442695, %v1038_v17 }
 0x331   : > { %1921 = vpow2.f32 %v1148_v46  ;;  %v3488_v46 = vld [vmem:[#allocation22_spill] sm:$0xff] }
 0x332   : > { %1923 = vpow2.f32 %v1198_v55 }
 0x333   : > { %1925 = vpow2.f32 %v1200_v6 }
 0x334   : > { %1927 = vpow2.f32 %v1114_v7 }
 0x335   : > { %1276 = vadd.xlane.f32.xlu1 %v1275_v10  ;;  %v1020_v10 = vmax.f32 %v2916_v18, %v2919_v5 }
 0x336   : > { %1018 = vmax.xlane.f32.xlu2 %v1017_v1  ;;  %v2927_v1 = vpop.eup %1915  ;;  %v927_v38 = vpop.f32.mrf.mxu3 }
 0x337   : > { %v2929_v25 = vpop.eup %1917  ;;  %v2951_v16 = vadd.f32 %v927_v38, %v2433_v36 }
 0x338   : > { %3484 = vst [vmem:[#allocation51_spill] sm:$0xff] %v2929_v25  ;;  %v2931_v60 = vpop.eup %1919  ;;  %v1293_v43 = vadd.f32 %v2929_v25, %v2927_v1  ;;  %v3505_v25 = vld [vmem:[#allocation30_spill] sm:$0xff] }
 0x339   : > { %v2933_v20 = vpop.eup %1921 }
 0x33a   : > { %v1260_v39 = vadd.f32 %v2933_v20, %v2931_v60 }
 0x33d   : > { %1282 = vadd.xlane.f32.xlu1 %v1281_v44  ;;  %v1039_v44 = vsub.f32 %v3485_v14, %v2747_v42  ;;  %v3487_v42 = vld [vmem:[#allocation43_spill] sm:$0xff] }
 0x33e   : > { %1231 = vadd.xlane.f32.xlu2 %v1230_v28  ;;  %v2943_v28 = vpop.eup %1923  ;;  %v1042_v2 = vsub.f32 %v3488_v46, %v3487_v42  ;;  %v3492_v46 = vld [vmem:[#allocation46_spill] sm:$0xff] }
 0x33f   : > { %v2945_v62 = vpop.eup %1925  ;;  %v1116_v50 = vmul.f32 1.442695, %v1039_v44  ;;  %v3491_v44 = vld [vmem:[#allocation34_spill] sm:$0xff] }
 0x340   : > { %3486 = vst [vmem:[#allocation26_spill] sm:$0xff] %v2945_v62  ;;  %v1299_v24 = vadd.f32 %v2945_v62, %v2943_v28  ;;  %v1122_v35 = vmul.f32 1.442695, %v1042_v2  ;;  %v2961_v36 = vpop.eup %1927  ;;  %v3493_v2 = vld [vmem:[#allocation31_spill] sm:$0xff] }
 0x341   : > { %1929 = vpow2.f32 %v1116_v50 }
 0x342   : > { %1931 = vpow2.f32 %v1122_v35 }
 0x345   : > { %1288 = vadd.xlane.f32.xlu1 %v1287_v41  ;;  %v3489_v41 = vld [vmem:[#allocation23_spill] sm:$0xff] }
 0x346   : > { %1021 = vmax.xlane.f32.xlu2 %v1020_v10  ;;  %v1043_v55 = vsub.f32 %v3489_v41, %v3487_v42  ;;  %v1023_v10 = vmax.f32 %v2948_v57, %v2951_v16  ;;  %v3494_v41 = vld [vmem:[#allocation32_spill] sm:$0xff] }
 0x347   : > { %v2963_v17 = vpop.eup %1929 }
 0x348   : > { %v1124_v6 = vmul.f32 1.442695, %v1043_v55  ;;  %v1236_v31 = vadd.f32 %v2963_v17, %v2961_v36  ;;  %v2971_v50 = vpop.eup %1931  ;;  %v1067_v55 = vsub.f32 %v3494_v41, %v3492_v46 }
 0x34a   : > { %1933 = vpow2.f32 %v1124_v6  ;;  %v1172_v35 = vmul.f32 1.442695, %v1067_v55  ;;  %v3500_v55 = vld [vmem:[#allocation44_spill] sm:$0xff] }
 0x34d   : > { %1294 = vadd.xlane.f32.xlu1 %v1293_v43  ;;  %v3490_v43 = vld [vmem:[#allocation33_spill] sm:$0xff] }
 0x34e   : > { %1261 = vadd.xlane.f32.xlu2 %v1260_v39  ;;  %v1062_v14 = vsub.f32 %v3490_v43, %v2763_v0  ;;  %v1063_v39 = vsub.f32 %v3491_v44, %v2763_v0  ;;  %v3496_v44 = vld [vmem:[#allocation27_spill] sm:$0xff] }
 0x350   : > { %v1162_v38 = vmul.f32 1.442695, %v1062_v14  ;;  %v1164_v7 = vmul.f32 1.442695, %v1063_v39  ;;  %v2973_v42 = vpop.eup %1933  ;;  %v3495_v14 = vld [vmem:[#allocation45_spill] sm:$0xff] }
 0x351   : > { %v1242_v0 = vadd.f32 %v2973_v42, %v2971_v50  ;;  %v1070_v39 = vsub.f32 %v3496_v44, %v3495_v14 }
 0x352   : > { %1935 = vpow2.f32 %v1162_v38 }
 0x353   : > { %1937 = vpow2.f32 %v1164_v7 }
 0x355   : > { %1300 = vadd.xlane.f32.xlu1 %v1299_v24  ;;  %v1066_v24 = vsub.f32 %v3493_v2, %v3492_v46  ;;  %v1178_v46 = vmul.f32 1.442695, %v1070_v39 }
 0x356   : > { %1024 = vmax.xlane.f32.xlu2 %v1023_v10 }
 0x357   : > { %v1170_v10 = vmul.f32 1.442695, %v1066_v24 }
 0x358   : > { %v2981_v6 = vpop.eup %1935 }
 0x359   : > { %v2983_v43 = vpop.eup %1937  ;;  %1939 = vpow2.f32 %v1170_v10  ;;  %v3502_v10 = vld [vmem:[#allocation25_spill] sm:$0xff] }
 0x35a   : > { %1941 = vpow2.f32 %v1172_v35  ;;  %v1272_v7 = vadd.f32 %v2983_v43, %v2981_v6  ;;  %v1075_v44 = vsub.f32 %v3502_v10, %v3500_v55 }
 0x35b   : > { %1943 = vpow2.f32 %v1178_v46 }
 0x35c   : > { %v1188_v39 = vmul.f32 1.442695, %v1075_v44 }
 0x35e   : > { %1237 = vadd.xlane.f32.xlu2 %v1236_v31  ;;  %v3497_v31 = vld [vmem:[#allocation28_spill] sm:$0xff] }
 0x35f   : > { %v1071_v38 = vsub.f32 %v3497_v31, %v3495_v14  ;;  %v2991_v24 = vpop.eup %1939  ;;  %v1010_v31 = vpop.xlane.xlu0 %1009 }
 0x360   : > { %3498 = vst [vmem:[#allocation43_spill] sm:$0xff] %v2991_v24  ;;  %v2993_v41 = vpop.eup %1941 }
 0x361   : > { %v1180_v2 = vmul.f32 1.442695, %v1071_v38  ;;  %3499 = vst [vmem:[#allocation22_spill] sm:$0xff] %v2993_v41  ;;  %v1278_v35 = vadd.f32 %v2993_v41, %v2991_v24  ;;  %v3001_v38 = vpop.eup %1943 }
 0x363   : > { %1945 = vpow2.f32 %v1180_v2 }
 0x366   : > { %1243 = vadd.xlane.f32.xlu2 %v1242_v0  ;;  %v3501_v0 = vld [vmem:[#allocation24_spill] sm:$0xff] }
 0x367   : > { %v1074_v9 = vsub.f32 %v3501_v0, %v3500_v55  ;;  %v3504_v0 = vld [vmem:[#allocation29_spill] sm:$0xff]  ;;  %v1079_v55 = vsub.f32 %v3505_v25, %v1010_v31 }
 0x368   : > { %v1078_v46 = vsub.f32 %v3504_v0, %v1010_v31 }
 0x369   : > { %v1186_v14 = vmul.f32 1.442695, %v1074_v9  ;;  %v1196_v9 = vmul.f32 1.442695, %v1079_v55 }
 0x36a   : > { %v1194_v10 = vmul.f32 1.442695, %v1078_v46 }
 0x36b   : > { %1947 = vpow2.f32 %v1186_v14 }
 0x36c   : > { %1949 = vpow2.f32 %v1188_v39  ;;  %v1253_v39 = vpop.xlane.xlu1 %1252 }
 0x36d   : > { %1951 = vpow2.f32 %v1194_v10 }
 0x36e   : > { %1273 = vadd.xlane.f32.xlu2 %v1272_v7  ;;  %v3003_v7 = vpop.eup %1945  ;;  %1953 = vpow2.f32 %v1196_v9 }
 0x36f   : > { %3503 = vst [vmem:[#allocation23_spill] sm:$0xff] %v3003_v7  ;;  %v1284_v2 = vadd.f32 %v3003_v7, %v3001_v38  ;;  %1955 = vrcp.f32 %v1253_v39  ;;  %v3509_v39 = vld [vmem:[#allocation42_spill] sm:$0xff] }
 0x371   : > { %v3011_v44 = vpop.eup %1947 }
 0x376   : > { %1279 = vadd.xlane.f32.xlu2 %v1278_v35  ;;  %v3013_v35 = vpop.eup %1949 }
 0x377   : > { %3506 = vst [vmem:[#allocation33_spill] sm:$0xff] %v3013_v35  ;;  %v1290_v14 = vadd.f32 %v3013_v35, %v3011_v44  ;;  %v3019_v25 = vpop.eup %1951 }
 0x378   : > { %v3021_v31 = vpop.eup %1953  ;;  %v1229_v55 = vpop.xlane.xlu1 %1228 }
 0x379   : > { %3507 = vst [vmem:[#allocation34_spill] sm:$0xff] %v3021_v31  ;;  %v1296_v46 = vadd.f32 %v3021_v31, %v3019_v25 }
 0x37e   : > { %1285 = vadd.xlane.f32.xlu2 %v1284_v2  ;;  %v3025_v2 = vpop.eup %1955 }
 0x37f   : > { %v3035_v7 = vmul.f32 %v3025_v2, %v3509_v39 }
 0x381   : > { %v3015_v41 = vpop.xlane.xlu2 %1219  ;;  %3510 = vst [vmem:[#allocation31_spill] sm:$0xff] %v3035_v7 }
 0x386   : > { %1291 = vadd.xlane.f32.xlu2 %v1290_v14 }
 0x389   : > { %v1250_v0 = vpop.xlane.xlu2 %1249 }
 0x38a   : > { %1957 = vrcp.f32 %v1250_v0 }
 0x38b   : > { %1959 = vrcp.f32 %v1229_v55 }
 0x38e   : > { %1297 = vadd.xlane.f32.xlu2 %v1296_v46 }
 0x390   : > { %v3027_v10 = vpop.eup %1957 }
 0x391   : > { %v1226_v9 = vpop.xlane.xlu2 %1225  ;;  %v3031_v14 = vmul.f32 %v3027_v10, %v2805_v34  ;;  %v3039_v35 = vpop.eup %1959 }
 0x392   : > { %1961 = vrcp.f32 %v1226_v9  ;;  %v3049_v34 = vmul.f32 %v3039_v35, %v2772_v49 }
 0x393   : > { %3508 = vst [vmem:[#allocation46_spill] sm:$0xff] %v3031_v14  ;;  %v1259_v14 = vpop.xlane.xlu1 %1258 }
 0x394   : > { %3512 = vst [vmem:[#allocation45_spill] sm:$0xff] %v3049_v34 }
 0x398   : > { %v3041_v21 = vpop.eup %1961 }
 0x399   : > { %v1016_v46 = vpop.xlane.xlu2 %1015  ;;  %v3045_v55 = vmul.f32 %v3041_v21, %v2821_v33 }
 0x39a   : > { %v1082_v39 = vsub.f32 %v2838_v12, %v1016_v46  ;;  %v1083_v9 = vsub.f32 %v2841_v54, %v1016_v46 }
 0x39b   : > { %3511 = vst [vmem:[#allocation32_spill] sm:$0xff] %v3045_v55  ;;  %v1235_v55 = vpop.xlane.xlu1 %1234 }
 0x39c   : > { %v1202_v62 = vmul.f32 1.442695, %v1082_v39  ;;  %v1204_v31 = vmul.f32 1.442695, %v1083_v9 }
 0x39e   : > { %1963 = vpow2.f32 %v1202_v62 }
 0x39f   : > { %1965 = vpow2.f32 %v1204_v31 }
 0x3a0   : > { %1967 = vrcp.f32 %v1259_v14 }
 0x3a1   : > { %v1256_v7 = vpop.xlane.xlu2 %1255 }
 0x3a2   : > { %1969 = vrcp.f32 %v1256_v7 }
 0x3a3   : > { %v1265_v24 = vpop.xlane.xlu1 %1264 }
 0x3a4   : > { %v3055_v33 = vpop.eup %1963 }
 0x3a5   : > { %v3057_v8 = vpop.eup %1965 }
 0x3a6   : > { %3513 = vst [vmem:[#allocation27_spill] sm:$0xff] %v3057_v8  ;;  %v3059_v49 = vpop.eup %1967  ;;  %v1302_v12 = vadd.f32 %v3057_v8, %v3055_v33 }
 0x3a7   : > { %v3068_v62 = vmul.f32 %v3059_v49, %v2781_v27 }
 0x3a8   : > { %v1970_v54 = vpop.eup %1969  ;;  %1303 = vadd.xlane.f32.xlu2 %v1302_v12 }
 0x3a9   : > { %v1019_v46 = vpop.xlane.xlu2 %1018  ;;  %v3064_v39 = vmul.f32 %v1970_v54, %v2857_v4 }
 0x3aa   : > { %v1084_v7 = vsub.f32 %v2876_v19, %v1019_v46  ;;  %v1085_v31 = vsub.f32 %v2879_v29, %v1019_v46 }
 0x3ab   : > { %3514 = vst [vmem:[#allocation28_spill] sm:$0xff] %v3064_v39 }
 0x3ac   : > { %v1206_v9 = vmul.f32 1.442695, %v1084_v7  ;;  %v1208_v0 = vmul.f32 1.442695, %v1085_v31 }
 0x3ae   : > { %1971 = vpow2.f32 %v1206_v9  ;;  %v3520_v9 = vld [vmem:[#allocation36_spill] sm:$0xff] }
 0x3af   : > { %1973 = vpow2.f32 %v1208_v0 }
 0x3b0   : > { %1975 = vrcp.f32 %v1235_v55 }
 0x3b1   : > { %v1232_v12 = vpop.xlane.xlu2 %1231 }
 0x3b2   : > { %1977 = vrcp.f32 %v1232_v12  ;;  %v3517_v12 = vld [vmem:[#allocation37_spill] sm:$0xff] }
 0x3b3   : > { %v1058_v14 = vsub.f32 %v3517_v12, %v3005_v3 }
 0x3b4   : > { %v3074_v4 = vpop.eup %1971 }
 0x3b5   : > { %v3076_v34 = vpop.eup %1973 }
 0x3b6   : > { %3515 = vst [vmem:[#allocation44_spill] sm:$0xff] %v3076_v34  ;;  %v3078_v27 = vpop.eup %1975  ;;  %v1305_v19 = vadd.f32 %v3076_v34, %v3074_v4  ;;  %v3518_v34 = vld [vmem:[#allocation38_spill] sm:$0xff] }
 0x3b7   : > { %v3090_v0 = vmul.f32 %v3078_v27, %v2799_v45  ;;  %v1154_v45 = vmul.f32 1.442695, %v1058_v14 }
 0x3b8   : > { %v3082_v29 = vpop.eup %1977  ;;  %1306 = vadd.xlane.f32.xlu1 %v1305_v19 }
 0x3b9   : > { %v1022_v46 = vpop.xlane.xlu2 %1021  ;;  %v3086_v7 = vmul.f32 %v3082_v29, %v2899_v59  ;;  %v1059_v59 = vsub.f32 %v3518_v34, %v3005_v3 }
 0x3ba   : > { %v1086_v55 = vsub.f32 %v2916_v18, %v1022_v46  ;;  %v1087_v31 = vsub.f32 %v2919_v5, %v1022_v46 }
 0x3bb   : > { %3516 = vst [vmem:[#allocation24_spill] sm:$0xff] %v3086_v7  ;;  %v1156_v39 = vmul.f32 1.442695, %v1059_v59  ;;  %v1029_v7 = vsub.f32 %v3520_v9, %v2861_v37 }
 0x3bc   : > { %v1210_v19 = vmul.f32 1.442695, %v1086_v55  ;;  %v1212_v8 = vmul.f32 1.442695, %v1087_v31 }
 0x3be   : > { %1979 = vpow2.f32 %v1210_v19 }
 0x3bf   : > { %1981 = vpow2.f32 %v1212_v8 }
 0x3c0   : > { %1983 = vrcp.f32 %v1265_v24  ;;  %v1241_v24 = vpop.xlane.xlu1 %1240 }
 0x3c1   : > { %v1262_v18 = vpop.xlane.xlu2 %1261 }
 0x3c2   : > { %1985 = vrcp.f32 %v1262_v18 }
 0x3c3   : > { %1987 = vpow2.f32 %v1154_v45 }
 0x3c4   : > { %v3100_v5 = vpop.eup %1979  ;;  %1989 = vpow2.f32 %v1156_v39 }
 0x3c5   : > { %v3102_v46 = vpop.eup %1981 }
 0x3c6   : > { %v1984_v12 = vpop.eup %1983  ;;  %v1308_v55 = vadd.f32 %v3102_v46, %v3100_v5 }
 0x3c7   : > { %v1376_v3 = vmul.f32 %v1984_v12, %v2813_v26  ;;  %v3108_v8 = vmul.f32 %v1984_v12, %v2815_v13  ;;  %v1370_v26 = vmul.f32 %v1970_v54, %v2853_v56  ;;  %v1366_v54 = vmul.f32 %v3027_v10, %v2801_v22  ;;  %v3523_v22 = vld [vmem:[#allocation40_spill] sm:$0xff] }
 0x3c8   : > { %v1986_v31 = vpop.eup %1985  ;;  %1309 = vadd.xlane.f32.xlu2 %v1308_v55  ;;  %v1061_v10 = vsub.f32 %v3523_v22, %v2887_v47 }
 0x3c9   : > { %v1374_v34 = vmul.f32 %v1986_v31, %v2931_v60  ;;  %v3112_v14 = vmul.f32 %v1986_v31, %v2933_v20  ;;  %v1025_v19 = vpop.xlane.xlu2 %1024  ;;  %v3114_v59 = vpop.eup %1987  ;;  %v3519_v60 = vld [vmem:[#allocation35_spill] sm:$0xff] }
 0x3ca   : > { %v1088_v39 = vsub.f32 %v2948_v57, %v1025_v19  ;;  %v1089_v45 = vsub.f32 %v2951_v16, %v1025_v19  ;;  %v3118_v18 = vpop.eup %1989  ;;  %v1028_v12 = vsub.f32 %v3519_v60, %v2861_v37  ;;  %v1372_v57 = vmul.f32 %v3059_v49, %v2779_v11  ;;  %v3521_v37 = vld [vmem:[#allocation41_spill] sm:$0xff]  ;;  %v1247_v11 = vpop.xlane.xlu1 %1246 }
 0x3cb   : > { %v1424_v55 = vpack.c.bf16 %v1376_v3, %v1374_v34  ;;  %v1425_v13 = vpack.c.bf16 %v3108_v8, %v3112_v14  ;;  %v1266_v16 = vadd.f32 %v3118_v18, %v3114_v59  ;;  %v1096_v34 = vmul.f32 1.442695, %v1029_v7  ;;  %v3528_v14 = vld [vmem:[#allocation43_spill] sm:$0xff] }
 0x3cc   : > { %v1214_v20 = vmul.f32 1.442695, %v1088_v39  ;;  %v1216_v31 = vmul.f32 1.442695, %v1089_v45  ;;  %v1422_v56 = vpack.c.bf16 %v1372_v57, %v1370_v26  ;;  %v1094_v3 = vmul.f32 1.442695, %v1028_v12 }
 0x3cd   : > { %1454 = vmatpush.bf16.msra.mxu0 %v1424_v55  ;;  %v1368_v9 = vmul.f32 %v3025_v2, %v3521_v37  ;;  %v3522_v45 = vld [vmem:[#allocation39_spill] sm:$0xff]  ;;  %v1160_v12 = vmul.f32 1.442695, %v1061_v10 }
 0x3ce   : > { %1991 = vpow2.f32 %v1214_v20  ;;  %v1060_v55 = vsub.f32 %v3522_v45, %v2887_v47 }
 0x3cf   : > { %1993 = vpow2.f32 %v1216_v31  ;;  %v1420_v49 = vpack.c.bf16 %v1368_v9, %v1366_v54 }
 0x3d0   : > { %1995 = vrcp.f32 %v1241_v24  ;;  %1267 = vadd.xlane.f32.xlu2 %v1266_v16  ;;  %v1158_v60 = vmul.f32 1.442695, %v1060_v55 }
 0x3d1   : > { %1455 = vmatpush.bf16.msra.mxu0 %v1422_v56  ;;  %v1238_v19 = vpop.xlane.xlu2 %1237 }
 0x3d2   : > { %1997 = vrcp.f32 %v1238_v19  ;;  %v1277_v54 = vpop.xlane.xlu1 %1276 }
 0x3d3   : > { %1999 = vpow2.f32 %v1094_v3 }
 0x3d4   : > { %v3135_v39 = vpop.eup %1991  ;;  %2001 = vpow2.f32 %v1096_v34 }
 0x3d5   : > { %v3139_v26 = vpop.eup %1993  ;;  %1456 = vmatpush.bf16.msra.mxu0 %v1420_v49  ;;  %2003 = vrcp.f32 %v1247_v11 }
 0x3d6   : > { %v1996_v7 = vpop.eup %1995  ;;  %v1311_v2 = vadd.f32 %v3139_v26, %v3135_v39 }
 0x3d7   : > { %v3149_v57 = vmul.f32 %v1996_v7, %v2835_v52 }
 0x3d8   : > { %v1998_v24 = vpop.eup %1997  ;;  %1312 = vadd.xlane.f32.xlu1 %v1311_v2 }
 0x3d9   : > { %v1244_v20 = vpop.xlane.xlu2 %1243  ;;  %v3146_v31 = vmul.f32 %v1998_v24, %v2963_v17  ;;  %v3151_v16 = vpop.eup %1999  ;;  %v1358_v22 = vmul.f32 %v1998_v24, %v2961_v36  ;;  %v1356_v36 = vmul.f32 %v3078_v27, %v2797_v58 }
 0x3da   : > { %2005 = vrcp.f32 %v1244_v20  ;;  %v3153_v47 = vpop.eup %2001 }
 0x3db   : > { %v1417_v56 = vpack.c.bf16 %v3149_v57, %v3146_v31  ;;  %2007 = vpow2.f32 %v1158_v60  ;;  %v2004_v3 = vpop.eup %2003  ;;  %v1221_v34 = vadd.f32 %v3153_v47, %v3151_v16  ;;  %v1354_v60 = vmul.f32 %v3082_v29, %v2895_v51  ;;  %v3540_v31 = vld [vmem:[#allocation27_spill] sm:$0xff] }
 0x3dc   : > { %2009 = vpow2.f32 %v1160_v12  ;;  %v1364_v37 = vmul.f32 %v2004_v3, %v2849_v61  ;;  %v3165_v11 = vmul.f32 %v2004_v3, %v2851_v15  ;;  %v1360_v61 = vmul.f32 %v1996_v7, %v2833_v53 }
 0x3dd   : > { %2011 = vrcp.f32 %v1277_v54  ;;  %v1414_v51 = vpack.c.bf16 %v1356_v36, %v1354_v60  ;;  %v1350_v29 = vmul.f32 %v3041_v21, %v2817_v23  ;;  %v1283_v54 = vpop.xlane.xlu1 %1282 }
 0x3de   : > { %v1416_v2 = vpack.c.bf16 %v1360_v61, %v1358_v22 }
 0x3e0   : > { %v2006_v17 = vpop.eup %2005  ;;  %1222 = vadd.xlane.f32.xlu1 %v1221_v34 }
 0x3e1   : > { %v1274_v52 = vpop.xlane.xlu2 %1273  ;;  %v1362_v19 = vmul.f32 %v2006_v17, %v2971_v50  ;;  %v3162_v9 = vmul.f32 %v2006_v17, %v2973_v42  ;;  %v3167_v49 = vpop.eup %2007  ;;  %v552_v50 = vld [vmem:[%s3392_s6 + $0x8] sm:$0xff] }
 0x3e2   : > { %2013 = vrcp.f32 %v1274_v52  ;;  %v3169_v45 = vpop.eup %2009 }
 0x3e3   : > { %v1418_v55 = vpack.c.bf16 %v1364_v37, %v1362_v19  ;;  %v1419_v10 = vpack.c.bf16 %v3165_v11, %v3162_v9  ;;  %v2012_v15 = vpop.eup %2011  ;;  %v1269_v42 = vadd.f32 %v3169_v45, %v3167_v49  ;;  %v3534_v11 = vld [vmem:[#allocation15_spill] sm:$0xff] }
 0x3e4   : > { %v3188_v7 = vmul.f32 %v2012_v15, %v2871_v63  ;;  %v3194_v20 = vmul.f32 %v2012_v15, %v2873_v32  ;;  %v1352_v63 = vmul.f32 %v3039_v35, %v2769_v48  ;;  %v553_v32 = vld [vmem:[%s3392_s6 + $0x10] sm:$0xff] }
 0x3e5   : > { %1457 = vmatpush.bf16.msra.mxu0 %v1418_v55  ;;  %v1289_v23 = vpop.xlane.xlu1 %1288 }
 0x3e6   : > { %v1412_v27 = vpack.c.bf16 %v1352_v63, %v1350_v29 }
 0x3e8   : > { %v2014_v12 = vpop.eup %2013  ;;  %1270 = vadd.xlane.f32.xlu1 %v1269_v42  ;;  %562 = vperm.xlu2 %1854, %v552_v50  }
 0x3e9   : > { %1458 = vmatpush.bf16.msra.mxu0 %v1416_v2  ;;  %v3185_v53 = vmul.f32 %v2014_v12, %v2981_v6  ;;  %v3191_v24 = vmul.f32 %v2014_v12, %v2983_v43  ;;  %v1280_v43 = vpop.xlane.xlu2 %1279 }
 0x3eb   : > { %v1428_v58 = vpack.c.bf16 %v3188_v7, %v3185_v53  ;;  %v1429_v6 = vpack.c.bf16 %v3194_v20, %v3191_v24  ;;  %v3536_v7 = vld [vmem:[#allocation20_spill] sm:$0xff] }
 0x3ed   : > { %1459 = vmatpush.bf16.msra.mxu0 %v1414_v51  ;;  %v1295_v34 = vpop.xlane.xlu1 %1294 }
 0x3f1   : > { %1460 = vmatpush.bf16.msra.mxu0 %v1412_v27  ;;  %v1286_v21 = vpop.xlane.xlu2 %1285 }
 0x3f5   : > { %v1301_v52 = vpop.xlane.xlu1 %1300 }
 0x3f9   : > { %v1292_v3 = vpop.xlane.xlu2 %1291 }
 0x401   : > { %567 = vperm.xlu1 %1853, %v553_v32   ;;  %v1298_v17 = vpop.xlane.xlu2 %1297 }
 0x41b   : > { %v1304_v19 = vpop.xlane.xlu2 %1303 }
 0x42b   : > { %v1307_v37 = vpop.xlane.xlu1 %1306 }
 0x43b   : > { %v1310_v55 = vpop.xlane.xlu2 %1309 }
 0x43c   : > { %2015 = vrcp.f32 %v1310_v55 }
 0x43d   : > { %2017 = vrcp.f32 %v1307_v37 }
 0x442   : > { %v3207_v22 = vpop.eup %2015 }
 0x443   : > { %v1268_v35 = vpop.xlane.xlu2 %1267  ;;  %v3209_v61 = vpop.eup %2017  ;;  %v1406_v15 = vmul.f32 %v3207_v22, %v3100_v5 }
 0x444   : > { %v1404_v36 = vmul.f32 %v3209_v61, %v3074_v4 }
 0x44b   : > { %v1313_v48 = vpop.xlane.xlu1 %1312  ;;  %v563_v63 = vpop.permute.xlu2 %562 }
 0x44c   : > { %2019 = vrcp.f32 %v1313_v48  ;;  %v3525_v48 = vld [vmem:[#allocation14_spill] sm:$0xff] }
 0x44d   : > { %2021 = vrcp.f32 %v1304_v19 }
 0x44e   : > { %2023 = vrcp.f32 %v1298_v17 }
 0x44f   : > { %2025 = vrcp.f32 %v3015_v41 }
 0x450   : > { %2027 = vrcp.f32 %v1301_v52  ;;  %v3524_v52 = vld [vmem:[#allocation16_spill] sm:$0xff] }
 0x451   : > { %2029 = vrcp.f32 %v1292_v3  ;;  %v558_v3 = vpop.permute.xlu0 %557  ;;  %v609_v19 = vadd.f32 %v3524_v52, %v563_v63 }
 0x452   : > { %v3212_v50 = vpop.eup %2019 }
 0x453   : > { %v1408_v42 = vmul.f32 %v3212_v50, %v3135_v39  ;;  %v1223_v2 = vpop.xlane.xlu1 %1222  ;;  %v3218_v60 = vpop.eup %2021 }
 0x454   : > { %2031 = vrcp.f32 %v1223_v2  ;;  %v3222_v51 = vpop.eup %2023  ;;  %v1402_v5 = vmul.f32 %v3218_v60, %v3055_v33  ;;  %v1403_v57 = vmul.f32 %v3218_v60, %v3540_v31 }
 0x455   : > { %v1440_v12 = vpack.c.bf16 %v1408_v42, %v1406_v15  ;;  %2033 = vrcp.f32 %v1295_v34  ;;  %v3224_v41 = vpop.eup %2025  ;;  %v1398_v32 = vmul.f32 %v3222_v51, %v3019_v25 }
 0x456   : > { %v3228_v29 = vpop.eup %2027  ;;  %2035 = vrcp.f32 %v1286_v21  ;;  %v1438_v27 = vpack.c.bf16 %v1404_v36, %v1402_v5  ;;  %v1346_v34 = vmul.f32 %v3224_v41, %v2787_v40  ;;  %v606_v40 = vadd.f32 %v3525_v48, %v558_v3  ;;  %v3529_v5 = vld [vmem:[#allocation48_spill] sm:$0xff]  ;;  %v3537_v48 = vld [vmem:[#allocation18_spill] sm:$0xff] }
 0x457   : > { %1473 = vmatpush.bf16.msra.mxu1 %v1440_v12  ;;  %v3230_v39 = vpop.eup %2029  ;;  %2037 = vrcp.f32 %v1289_v23  ;;  %v1400_v21 = vmul.f32 %v3228_v29, %v2943_v28  ;;  %v3526_v12 = vld [vmem:[#allocation28_spill] sm:$0xff] }
 0x458   : > { %2039 = vrcp.f32 %v1280_v43  ;;  %v1394_v23 = vmul.f32 %v3230_v39, %v3011_v44  ;;  %v3254_v43 = vpack.c.bf16 %v609_v19, %v606_v40  ;;  %v3527_v36 = vpack.c.bf16 %v3068_v62, %v3526_v12  ;;  %v3541_v40 = vld [vmem:[#allocation34_spill] sm:$0xff]  ;;  %v3546_v12 = vld [vmem:[#allocation47_spill] sm:$0xff] }
 0x459   : > { %v1436_v37 = vpack.c.bf16 %v1400_v21, %v1398_v32  ;;  %2041 = vrcp.f32 %v1283_v54  ;;  %v3531_v32 = vld [vmem:[#allocation46_spill] sm:$0xff]  ;;  %v573_v19 = vpop.permute.xlu0 %572  ;;  %v1347_v60 = vmul.f32 %v3224_v41, %v3546_v12 }
 0x45a   : > { %v3234_v4 = vpop.eup %2031 }
 0x45b   : > { %1474 = vmatpush.bf16.msra.mxu1 %v1438_v27  ;;  %v1348_v33 = vmul.f32 %v3234_v4, %v3151_v16  ;;  %v3242_v17 = vpop.eup %2033  ;;  %v1271_v15 = vpop.xlane.xlu1 %1270  ;;  %v3530_v27 = vld [vmem:[#allocation31_spill] sm:$0xff] }
 0x45c   : > { %v3247_v55 = vpop.eup %2035  ;;  %v1396_v28 = vmul.f32 %v3242_v17, %v2927_v1  ;;  %2043 = vrcp.f32 %v1271_v15  ;;  %v3542_v15 = vld [vmem:[#allocation26_spill] sm:$0xff] }
 0x45d   : > { %v1410_v25 = vpack.c.bf16 %v1348_v33, %v1346_v34  ;;  %v3252_v16 = vpop.eup %2037  ;;  %v1390_v42 = vmul.f32 %v3247_v55, %v3001_v38  ;;  %2045 = vrcp.f32 %v1268_v35  ;;  %v3532_v34 = vpack.c.bf16 %v3530_v27, %v3531_v32  ;;  %v3551_v32 = vld [vmem:[#allocation50_spill] sm:$0xff] }
 0x45e   : > { %v1434_v44 = vpack.c.bf16 %v1396_v28, %v1394_v23  ;;  %v2040_v2 = vpop.eup %2039  ;;  %v1392_v1 = vmul.f32 %v3252_v16, %v2911_v30  ;;  %v1409_v35 = vmul.f32 %v3212_v50, %v3139_v26  ;;  %v1349_v28 = vmul.f32 %v3234_v4, %v3153_v47 }
 0x45f   : > { %1461 = vmatpush.bf16.msra.mxu0 %v1410_v25  ;;  %1475 = vmatpush.bf16.msra.mxu1 %v1436_v37  ;;  %v2042_v54 = vpop.eup %2041  ;;  %v1407_v25 = vmul.f32 %v3207_v22, %v3102_v46  ;;  %v3533_v37 = vld [vmem:[#allocation17_spill] sm:$0xff]  ;;  %v3538_v22 = vld [vmem:[#allocation24_spill] sm:$0xff]  ;;  %v1393_v41 = vmul.f32 %v3252_v16, %v3551_v32 }
 0x460   : > { %v1432_v8 = vpack.c.bf16 %v1392_v1, %v1390_v42  ;;  %v1388_v38 = vmul.f32 %v2042_v54, %v3529_v5  ;;  %v638_v23 = vadd.f32 %v3533_v37, %v563_v63  ;;  %v3539_v63 = vpack.c.bf16 %v3090_v0, %v3538_v22  ;;  %v3543_v0 = vld [vmem:[#allocation45_spill] sm:$0xff]  ;;  %v3544_v42 = vld [vmem:[#allocation32_spill] sm:$0xff]  ;;  %v3549_v5 = vld [vmem:[#allocation23_spill] sm:$0xff] }
 0x461   : > { %v1441_v26 = vpack.c.bf16 %v1409_v35, %v1407_v25  ;;  %v3545_v1 = vpack.c.bf16 %v3543_v0, %v3544_v42  ;;  %v3554_v25 = vld [vmem:[#allocation49_spill] sm:$0xff]  ;;  %v1573_v22 = vld [vmem:[%s2294_s16 + $0x30] sm:$0xff] }
 0x462   : > { %1462 = vmatmul.bf16.vlgmr.msra.gmra.mxu0 %v3254_v43  ;;  %v2044_v21 = vpop.eup %2043  ;;  %v1570_v0 = vld [vmem:[%s2294_s16 + $0x18] sm:$0xff] }
 0x463   : > { %1492 = vmatpush.bf16.msrb.mxu0 %v1425_v13  ;;  %1476 = vmatpush.bf16.msra.mxu1 %v1434_v44  ;;  %v1386_v13 = vmul.f32 %v2040_v2, %v3528_v14  ;;  %v2046_v30 = vpop.eup %2045  ;;  %v1380_v62 = vmul.f32 %v2044_v21, %v3167_v49  ;;  %v635_v49 = vadd.f32 %v3534_v11, %v558_v3 }
 0x464   : > { %v1378_v52 = vmul.f32 %v2046_v30, %v3114_v59  ;;  %v1401_v44 = vmul.f32 %v3228_v29, %v3542_v15  ;;  %v1391_v29 = vmul.f32 %v3247_v55, %v3549_v5  ;;  %v1381_v55 = vmul.f32 %v2044_v21, %v3169_v45  ;;  %v1567_v45 = vld [vmem:[%s2294_s16] sm:$0xff]  ;;  %v1574_v5 = vld [vmem:[%s2294_s16 + $0x38] sm:$0xff] }
 0x465   : > { %v1430_v33 = vpack.c.bf16 %v1388_v38, %v1386_v13  ;;  %v1451_v50 = vpack.c.bf16 %v638_v23, %v635_v49  ;;  %v3548_v13 = vld [vmem:[#allocation51_spill] sm:$0xff]  ;;  %v1379_v16 = vmul.f32 %v2046_v30, %v3118_v18  ;;  %v1558_v23 = vstv %s1549_s28  ;;  %v1569_v30 = vld [vmem:[%s2294_s16 + $0x10] sm:$0xff] }
 0x466   : > { %v1426_v9 = vpack.c.bf16 %v1380_v62, %v1378_v52  ;;  %v1397_v47 = vmul.f32 %v3242_v17, %v3548_v13  ;;  %v3550_v38 = vld [vmem:[#allocation19_spill] sm:$0xff]  ;;  %v1433_v62 = vpack.c.bf16 %v1393_v41, %v1391_v29  ;;  %v1389_v17 = vmul.f32 %v2042_v54, %v3554_v25 }
 0x467   : > { %1493 = vmatpush.bf16.msrb.mxu0 %v3527_v36  ;;  %1477 = vmatpush.bf16.msra.mxu1 %v1432_v8  ;;  %v3547_v8 = vld [vmem:[#allocation33_spill] sm:$0xff] }
 0x468   : > { %v1395_v14 = vmul.f32 %v3230_v39, %v3547_v8  ;;  %v3553_v39 = vld [vmem:[#allocation22_spill] sm:$0xff]  ;;  %v1572_v8 = vld [vmem:[%s2294_s16 + $0x28] sm:$0xff] }
 0x469   : > { %v1387_v35 = vmul.f32 %v2040_v2, %v3553_v39  ;;  %v1427_v2 = vpack.c.bf16 %v1381_v55, %v1379_v16 }
 0x46a   : > { %v1435_v4 = vpack.c.bf16 %v1397_v47, %v1395_v14 }
 0x46b   : > { %1494 = vmatpush.bf16.msrb.mxu0 %v3532_v34  ;;  %1478 = vmatpush.bf16.msra.mxu1 %v1430_v33  ;;  %v3552_v34 = vld [vmem:[#allocation21_spill] sm:$0xff]  ;;  %v1431_v37 = vpack.c.bf16 %v1389_v17, %v1387_v35 }
 0x46c   : > { %v644_v33 = vadd.f32 %v3552_v34, %v573_v19 }
 0x46f   : > { %1495 = vmatpush.bf16.msrb.mxu0 %v1419_v10  ;;  %1479 = vmatpush.bf16.msra.mxu1 %v1428_v58  ;;  %v3535_v10 = vld [vmem:[#allocation44_spill] sm:$0xff]  ;;  %v615_v58 = vadd.f32 %v3536_v7, %v573_v19  ;;  %v1571_v7 = vld [vmem:[%s2294_s16 + $0x20] sm:$0xff] }
 0x470   : > { %v1405_v53 = vmul.f32 %v3209_v61, %v3535_v10  ;;  %v1399_v61 = vmul.f32 %v3222_v51, %v3541_v40  ;;  %v1411_v51 = vpack.c.bf16 %v1349_v28, %v1347_v60 }
 0x472   : > { %v1439_v3 = vpack.c.bf16 %v1405_v53, %v1403_v57  ;;  %v1437_v36 = vpack.c.bf16 %v1401_v44, %v1399_v61 }
 0x473   : > { %1496 = vmatpush.bf16.msrb.mxu0 %v1417_v56  ;;  %v568_v59 = vpop.permute.xlu1 %567  ;;  %1480 = vmatpush.bf16.msra.mxu1 %v1426_v9 }
 0x474   : > { %v612_v46 = vadd.f32 %v3537_v48, %v568_v59  ;;  %v641_v27 = vadd.f32 %v3550_v38, %v568_v59 }
 0x476   : > { %1481 = vmatmul.bf16.vlgmr.msra.gmra.mxu1 %v1451_v50  ;;  %v1452_v56 = vpack.c.bf16 %v615_v58, %v612_v46  ;;  %v1453_v52 = vpack.c.bf16 %v644_v33, %v641_v27 }
 0x477   : > { %1497 = vmatpush.bf16.msrb.mxu0 %v3539_v63  ;;  %1511 = vmatpush.bf16.msrb.mxu1 %v1441_v26 }
 0x478   : > { %1467 = vmatmul.bf16.gmra.mxu0 %v1452_v56 }
 0x47b   : > { %1512 = vmatpush.bf16.msrb.mxu1 %v1439_v3  ;;  %1498 = vmatpush.bf16.msrb.mxu0 %v3545_v1  ;;  %v1568_v3 = vld [vmem:[%s2294_s16 + $0x8] sm:$0xff] }
 0x47f   : > { %1513 = vmatpush.bf16.msrb.mxu1 %v1437_v36  ;;  %1499 = vmatpush.bf16.msrb.mxu0 %v1411_v51 }
 0x483   : > { %1514 = vmatpush.bf16.msrb.mxu1 %v1435_v4 }
 0x486   : > { %1486 = vmatmul.bf16.gmra.mxu1 %v1453_v52 }
 0x487   : > { %1515 = vmatpush.bf16.msrb.mxu1 %v1433_v62 }
 0x488   : > { %1500 = vmatmul.bf16.vlgmr.msrb.gmra.mxu0 %v3254_v43 }
 0x48b   : > { %1516 = vmatpush.bf16.msrb.mxu1 %v1431_v37 }
 0x48f   : > { %1517 = vmatpush.bf16.msrb.mxu1 %v1429_v6 }
 0x493   : > { %1518 = vmatpush.bf16.msrb.mxu1 %v1427_v2 }
 0x496   : > { %1519 = vmatmul.bf16.vlgmr.msrb.gmra.mxu1 %v1451_v50 }
 0x498   : > { %1505 = vmatmul.bf16.gmra.mxu0 %v1452_v56 }
 0x4a6   : > { %1524 = vmatmul.bf16.gmra.mxu1 %v1453_v52 }
 0x4df   : > { %v1463_v54 = vpop.f32.mrf.mxu0 }
 0x4e7   : > { %v1465_v43 = vpop.f32.mrf.mxu0 }
 0x4f3   : > { %v1482_v19 = vpop.f32.mrf.mxu1 }
 0x4f4   : > { %v1483_v9 = vadd.f32 %v1482_v19, %v1463_v54 }
 0x4f5   : > { %v1468_v20 = vpop.f32.mrf.mxu0 }
 0x4f6   : > { %v1559_v21 = vmul.f32 %v1558_v23, %v1483_v9 }
 0x4f8   : > { %v1575_v24 = vadd.f32 %v1567_v45, %v1559_v21 }
 0x4fa   : > { %1583 = vst [vmem:[%s3330_s7] sm:$0xff] %v1575_v24 }
 0x4fb   : > { %v1484_v18 = vpop.f32.mrf.mxu1 }
 0x4fc   : > { %v1485_v6 = vadd.f32 %v1484_v18, %v1465_v43 }
 0x4fd   : > { %v1470_v26 = vpop.f32.mrf.mxu0 }
 0x4fe   : > { %v1561_v11 = vmul.f32 %v1558_v23, %v1485_v6 }
 0x500   : > { %v1577_v49 = vadd.f32 %v1569_v30, %v1561_v11 }
 0x502   : > { %1585 = vst [vmem:[%s3330_s7 + $0x10] sm:$0xff] %v1577_v49 }
 0x503   : > { %v1487_v10 = vpop.f32.mrf.mxu1 }
 0x504   : > { %v1488_v53 = vadd.f32 %v1487_v10, %v1468_v20 }
 0x505   : > { %v1501_v46 = vpop.f32.mrf.mxu0 }
 0x506   : > { %v1563_v58 = vmul.f32 %v1558_v23, %v1488_v53 }
 0x508   : > { %v1579_v59 = vadd.f32 %v1571_v7, %v1563_v58 }
 0x50a   : > { %1587 = vst [vmem:[%s3330_s7 + $0x20] sm:$0xff] %v1579_v59 }
 0x50b   : > { %v1489_v50 = vpop.f32.mrf.mxu1 }
 0x50c   : > { %v1490_v48 = vadd.f32 %v1489_v50, %v1470_v26 }
 0x50d   : > { %v1503_v61 = vpop.f32.mrf.mxu0 }
 0x50e   : > { %v1565_v63 = vmul.f32 %v1558_v23, %v1490_v48 }
 0x510   : > { %v1581_v31 = vadd.f32 %v1573_v22, %v1565_v63 }
 0x512   : > { %1589 = vst [vmem:[%s3330_s7 + $0x30] sm:$0xff] %v1581_v31 }
 0x513   : > { %v1520_v57 = vpop.f32.mrf.mxu1 }
 0x514   : > { %v1521_v56 = vadd.f32 %v1520_v57, %v1501_v46 }
 0x515   : > { %v1506_v12 = vpop.f32.mrf.mxu0 }
 0x516   : > { %v1560_v40 = vmul.f32 %v1558_v23, %v1521_v56 }
 0x518   : > { %v1576_v28 = vadd.f32 %v1568_v3, %v1560_v40 }
 0x51a   : > { %1584 = vst [vmem:[%s3330_s7 + $0x8] sm:$0xff] %v1576_v28 }
 0x51b   : > { %v1522_v15 = vpop.f32.mrf.mxu1 }
 0x51c   : > { %v1523_v44 = vadd.f32 %v1522_v15, %v1503_v61 }
 0x51d   : > { %v1508_v13 = vpop.f32.mrf.mxu0 }
 0x51e   : > { %v1562_v42 = vmul.f32 %v1558_v23, %v1523_v44 }
 0x520   : > { %v1578_v1 = vadd.f32 %v1570_v0, %v1562_v42 }
 0x522   : > { %1586 = vst [vmem:[%s3330_s7 + $0x18] sm:$0xff] %v1578_v1 }
 0x523   : > { %v1525_v60 = vpop.f32.mrf.mxu1 }
 0x524   : > { %v1526_v36 = vadd.f32 %v1525_v60, %v1506_v12 }
 0x526   : > { %v1564_v14 = vmul.f32 %v1558_v23, %v1526_v36 }
 0x528   : > { %v1580_v51 = vadd.f32 %v1572_v8, %v1564_v14 }
 0x52a   : > { %1588 = vst [vmem:[%s3330_s7 + $0x28] sm:$0xff] %v1580_v51 }
 0x52b   : > { %v1527_v47 = vpop.f32.mrf.mxu1 }
 0x52c   : > { %v1528_v4 = vadd.f32 %v1527_v47, %v1508_v13 }
 0x52e   : > { %v1566_v29 = vmul.f32 %v1558_v23, %v1528_v4 }
 0x530   : > { %v1582_v38 = vadd.f32 %v1574_v5, %v1566_v29 }
 0x532   : > { %1590 = vst [vmem:[%s3330_s7 + $0x38] sm:$0xff] %v1582_v38 }
 0x533   : > { %2104 = shalt.err (!%p2101_p13)
}
 0x534   : > { %s2164_s11 = smov 256   ;;  %s2165_s16 = smov 16  }
 0x535   : > { %1787 = dma.vmem_to_hbm [thread:$0]  (%p2265_p9), %s1605_s24, 1024, %s1607_s14, %s1592_s18, %s2164_s11, %s2164_s11, %s2165_s16  }
 0x536 PF: > { %s1621_s7 = sand.u32 1, %s2139_s29   ;;  %p1794_p0 = pnand %p1693_p12, %p2272_p11 }
 0x537   : > { %s1622_s17 = scalar_lea.sflag [#allocation8], %s1621_s7 }
 0x538   : > { %p1795_p1 = pneg %p1794_p0 }
 0x53a   : > { %2134 = dma.done.wait (%p1795_p1), %s1622_s17, 1024  }
 0x53b   : > { %2136 = vsyncadd (%p1795_p1), %s1622_s17, 4294966272  ;;  %s25_s12 = sadd.s32 1, %s2159_s12   ;;  %s3555_s10 = sld [smem:[#allocation12_spill]] }
 0x53c   : > { %p22_p2 = scmp.ge.s32.totalorder %s25_s12, 4   ;;  %s3556_s11 = sld [smem:[#allocation13_spill]] }
 0x53d   : > { %s3557_s29 = smov %s2143_s30  ;;  %s3558_s30 = smov %s2147_s9 }
 0x53e   : > { %s3559_s9 = smov %s2270_s20  ;;  %24 = sbr.rel (!%p22_p2) target bundleno = 8 (0x8), region = 106 }
 0x543   :  { %1628 = vsyncpa [#allocation7], 1 }
 0x544   :  { %1630 = vsyncpa [#allocation7 + $0x1], 1 }
 0x545   :  { %1631 = vsyncpa [#allocation8], 1 }
 0x546   :  { %1633 = vsyncpa [#allocation8 + $0x1], 1 }

</bundles_post_ra>
